<compile_context>
chip_gen: v7x
topology: tpu7x:2x2x1
jax: 0.10.0
libtpu: 0.0.40
codegen_flags: <defaults>
</compile_context>

<pallas_src>
import numpy as np

import jax
import jax.numpy as jnp
from jax import lax
from jax.experimental import pallas as pl
from jax.experimental.pallas import tpu as pltpu

_LANE = 128


def _round_up(x, m):
    return ((x + m - 1) // m) * m


def _vmem_capacity_bytes():
    """Per-core VMEM capacity, clamped to sane bounds; conservative fallback."""
    try:
        cap = int(pltpu.get_tpu_info().vmem_capacity_bytes)
        if cap > 0:
            return max(32 << 20, min(cap, 128 << 20))
    except Exception:
        pass
    return 64 << 20  # v7x per-TensorCore VMEM (safe everywhere)


def _choose_batch_blocking(N):
    """Fold batch into (R, 128) planes; pick block_R (multiple of 8)."""
    r_raw = max(1, -(-N // _LANE))
    if r_raw <= 8:
        # Pad to one full (8,128) vreg per plane; too small to split usefully.
        return 8, 8
    # Pad so we can always split into >= 2 blocks whose sublane count is a
    # multiple of 8 (keeps stores unmasked and gives both v7x cores work).
    R = _round_up(r_raw, 16)
    block_R = 8
    for cand in (128, 64, 32, 16):        # bias block_R upward (VALU slot fill)
        if R % cand == 0 and R // cand >= 2:
            block_R = cand
            break
    return R, block_R


def _choose_time_blocking(T, block_R, vmem_budget):
    """Largest T_blk whose double-buffered output block fits the VMEM budget."""
    plane_bytes = 4 * block_R * _LANE
    step_bytes = 2 * 2 * plane_bytes                 # 2 comps/step, double-buffered
    fixed_bytes = (2 * (2 + 4) + 2) * plane_bytes    # z0+params (dbl-buf) + scratch
    avail = max(vmem_budget - fixed_bytes - (2 << 20), step_bytes)
    t_max = max(1, avail // step_bytes)
    t_blk = int(min(T, t_max, 1024))                 # hard cap bounds code size
    t_pad = _round_up(T, t_blk)
    return t_blk, t_pad


def _lv_rk4_kernel(dt_ref, z0_ref, params_ref, out_ref, z_scr):
    """One (batch-block, time-block) tile of the RK4 (3/8 rule) integration.

    dt_ref:     SMEM (T_pad,)            dt[i] = t[i]-t[i-1]; dt[0]=0, padding=0
    z0_ref:     VMEM (2, bR, 128)        initial state planes [z1; z2]
    params_ref: VMEM (4, bR, 128)        parameter planes [a; b; c; d]
    out_ref:    VMEM (T_blk, 2, bR, 128) trajectory block
    z_scr:      VMEM (2, bR, 128)        state carried across time blocks
    """
    tb = pl.program_id(1)
    t_blk = out_ref.shape[0]
    base = tb * t_blk
    plane = z_scr.shape[1:]

    a = params_ref[0]
    b = params_ref[1]
    c = params_ref[2]
    d = params_ref[3]

    @pl.when(tb == 0)
    def _():
        z_scr[0] = z0_ref[0]
        z_scr[1] = z0_ref[1]

    third = jnp.float32(1.0 / 3.0)
    eighth = jnp.float32(0.125)

    def deriv(u1, u2):
        p = u1 * u2
        return a * u1 - b * p, d * p - c * u2

    def step(local, z1, z2):
        dt = dt_ref[base + local]                 # scalar from SMEM
        dt3 = dt * third                          # scalar math first
        dt8 = dt * eighth
        # Hoist scalar->vector broadcasts once per step (JAX does not CSE them).
        dt_v = jnp.full(plane, dt, jnp.float32)
        dt3_v = jnp.full(plane, dt3, jnp.float32)
        dt8_v = jnp.full(plane, dt8, jnp.float32)

        k11, k12 = deriv(z1, z2)
        k21, k22 = deriv(z1 + dt3_v * k11, z2 + dt3_v * k12)
        k31, k32 = deriv(z1 + dt_v * (k21 - third * k11),
                         z2 + dt_v * (k22 - third * k12))
        k41, k42 = deriv(z1 + dt_v * (k11 - k21 + k31),
                         z2 + dt_v * (k12 - k22 + k32))
        z1 = z1 + dt8_v * (k11 + 3.0 * (k21 + k31) + k41)
        z2 = z2 + dt8_v * (k12 + 3.0 * (k22 + k32) + k42)
        out_ref[local, 0] = z1                    # dense (block_R, 128) stores
        out_ref[local, 1] = z2
        return z1, z2

    z1 = z_scr[0]
    z2 = z_scr[1]

    # dt == 0 for the very first global index and for any T padding, which
    # makes those steps exact no-ops (out[0] == z0; padded rows are discarded).
    if t_blk <= 32:
        for local in range(t_blk):                # small block: full unroll
            z1, z2 = step(local, z1, z2)
    else:                                         # big block: bounded code size
        def body(local, carry):
            return step(local, *carry)
        z1, z2 = lax.fori_loop(0, t_blk, body, (z1, z2), unroll=8)

    z_scr[0] = z1
    z_scr[1] = z2


def params_model_forward(mini_batch, t, params):
    """Forward pass of ParamsModel.

    mini_batch: (N, S, 2) -- only [:, 0, :] is used as z0
    t:          (T,)      -- time grid for the RK4 integrator
    params:     (N, 4)    -- learnable [a, b, c, d] per batch element
    returns:    (N, T, 2) -- predicted z trajectory
    """
    N = int(mini_batch.shape[0])
    T = int(t.shape[0])

    R, block_R = _choose_batch_blocking(N)
    num_b = R // block_R
    N_pad = R * _LANE

    vmem_cap = _vmem_capacity_bytes()
    vmem_budget = int(vmem_cap * 0.70)            # ~45 MiB v7x, ~90 MiB v5e/v6e
    T_blk, T_pad = _choose_time_blocking(T, block_R, vmem_budget)
    num_t = T_pad // T_blk

    # ---- component/param planes in (comp, R, 128) layout (zero padded) ----
    z0 = jnp.asarray(mini_batch, jnp.float32)[:, 0, :]          # (N, 2)
    prm = jnp.asarray(params, jnp.float32)                      # (N, 4)
    z0_t = jnp.zeros((2, N_pad), jnp.float32).at[:, :N].set(z0.T)
    z0_t = z0_t.reshape(2, R, _LANE)
    params_t = jnp.zeros((4, N_pad), jnp.float32).at[:, :N].set(prm.T)
    params_t = params_t.reshape(4, R, _LANE)

    # ---- dt table (scalar-prefetched to SMEM): dt[0]=0, dt[i]=t[i]-t[i-1] ----
    tf = jnp.asarray(t, jnp.float32)
    dt = jnp.concatenate([jnp.zeros((1,), jnp.float32), tf[1:] - tf[:-1]])
    dt_full = jnp.zeros((T_pad,), jnp.float32).at[:T].set(dt)

    # ---- scoped VMEM limit: what we need plus headroom, capped per chip ----
    plane_bytes = 4 * block_R * _LANE
    vmem_needed = (2 * T_blk * 2 * plane_bytes    # double-buffered output block
                   + 2 * 6 * plane_bytes          # z0 + params (double-buffered)
                   + 2 * plane_bytes)             # state scratch
    vmem_limit = int(max(32 << 20,
                         min(vmem_needed + (16 << 20),
                             int(vmem_cap * 0.9), 120 << 20)))

    grid_spec = pltpu.PrefetchScalarGridSpec(
        num_scalar_prefetch=1,                    # dt_full -> SMEM, once
        grid=(num_b, num_t),
        in_specs=[
            pl.BlockSpec((2, block_R, _LANE), lambda bb, tb, dt_ref: (0, bb, 0)),
            pl.BlockSpec((4, block_R, _LANE), lambda bb, tb, dt_ref: (0, bb, 0)),
        ],
        out_specs=pl.BlockSpec((T_blk, 2, block_R, _LANE),
                               lambda bb, tb, dt_ref: (tb, 0, bb, 0)),
        scratch_shapes=[pltpu.VMEM((2, block_R, _LANE), jnp.float32)],
    )

    out = pl.pallas_call(
        _lv_rk4_kernel,
        out_shape=jax.ShapeDtypeStruct((T_pad, 2, R, _LANE), jnp.float32),
        grid_spec=grid_spec,
        compiler_params=pltpu.CompilerParams(
            # batch blocks parallel (megacore), time sequential (state carry)
            dimension_semantics=("parallel", "arbitrary"),
            vmem_limit_bytes=vmem_limit),
    )(dt_full, z0_t, params_t)

    # (T_pad, 2, R, 128) -> (N, T, 2), matching .permute(1, 0, 2)[:, :, :2]
    out = out.reshape(T_pad, 2, N_pad)[:T, :, :N]
    return jnp.transpose(out, (2, 0, 1))


def _reference_forward_np(mini_batch, t, params):
    """Pure-numpy reference of the same fixed-grid RK4 (3/8 rule) integrator."""
    z = np.asarray(mini_batch, np.float32)[:, 0, :]
    p = np.asarray(params, np.float32)
    a, b, c, d = p[:, 0], p[:, 1], p[:, 2], p[:, 3]
    tt = np.asarray(t, np.float32)

    def deriv(z):
        z1, z2 = z[:, 0], z[:, 1]
        return np.stack([a * z1 - b * z1 * z2, d * z1 * z2 - c * z2], axis=1)

    outs = [z]
    for i in range(1, tt.shape[0]):
        dt = tt[i] - tt[i - 1]
        k1 = deriv(z)
        k2 = deriv(z + dt * k1 / 3.0)
        k3 = deriv(z + dt * (k2 - k1 / 3.0))
        k4 = deriv(z + dt * (k1 - k2 + k3))
        z = z + dt * (k1 + 3.0 * (k2 + k3) + k4) / 8.0
        outs.append(z)
    return np.stack(outs, axis=1)                 # (N, T, 2)


if __name__ == "__main__":
    key = jax.random.PRNGKey(0)

    # Small shapes consistent with the module: batch=8, seq=5, T=8.
    data_size, seq_len, num_t = 8, 5, 8
    mini_batch = jax.random.uniform(
        key, (data_size, seq_len, 2), jnp.float32, minval=0.5, maxval=2.0)
    t = jnp.linspace(0.0, 1.0, num_t, dtype=jnp.float32)
    params = jnp.ones((data_size, 4), jnp.float32) * 1.5   # nn.Parameter init

    pred = jax.block_until_ready(params_model_forward(mini_batch, t, params))
    assert pred.shape == (data_size, num_t, 2), pred.shape

    ref = _reference_forward_np(np.asarray(mini_batch), np.asarray(t),
                                np.asarray(params))
    err = float(np.max(np.abs(np.asarray(pred) - ref)))
    assert np.allclose(np.asarray(pred), ref, rtol=1e-4, atol=1e-4), err

    print("KERNEL_OK")
</pallas_src>

<mosaic_0001>
module attributes {stable_mosaic.version = 11 : i64} {
  func.func @_lv_rk4_kernel(%arg0: i32, %arg1: i32, %arg2: memref<8xf32, #tpu.memory_space<smem>>, %arg3: memref<2x8x128xf32, #tpu.memory_space<vmem>>, %arg4: memref<4x8x128xf32, #tpu.memory_space<vmem>>, %arg5: memref<8x2x8x128xf32, #tpu.memory_space<vmem>>, %arg6: memref<2x8x128xf32, #tpu.memory_space<vmem>>) attributes {dimension_semantics = [#tpu.dimension_semantics<parallel>, #tpu.dimension_semantics<arbitrary>], iteration_bounds = array<i64: 1, 1>, scalar_prefetch = 1 : i64, scratch_operands = 1 : i64, tpu.core_type = #tpu.core_type<tc>, window_params = [{transform_indices = @transform_0, window_bounds = array<i64: 2, 8, 128>}, {transform_indices = @transform_1, window_bounds = array<i64: 4, 8, 128>}, {transform_indices = @transform_2, window_bounds = array<i64: 8, 2, 8, 128>}]} {
    %c8_i32 = arith.constant 8 : i32
    %0 = arith.muli %arg1, %c8_i32 : i32
    %c0 = arith.constant 0 : index
    %c0_0 = arith.constant 0 : index
    %c0_1 = arith.constant 0 : index
    %1 = vector.load %arg4[%c0, %c0_0, %c0_1] : memref<4x8x128xf32, #tpu.memory_space<vmem>>, vector<1x8x128xf32>
    %2 = vector.shape_cast %1 : vector<1x8x128xf32> to vector<8x128xf32>
    %c1 = arith.constant 1 : index
    %c0_2 = arith.constant 0 : index
    %c0_3 = arith.constant 0 : index
    %3 = vector.load %arg4[%c1, %c0_2, %c0_3] : memref<4x8x128xf32, #tpu.memory_space<vmem>>, vector<1x8x128xf32>
    %4 = vector.shape_cast %3 : vector<1x8x128xf32> to vector<8x128xf32>
    %c2 = arith.constant 2 : index
    %c0_4 = arith.constant 0 : index
    %c0_5 = arith.constant 0 : index
    %5 = vector.load %arg4[%c2, %c0_4, %c0_5] : memref<4x8x128xf32, #tpu.memory_space<vmem>>, vector<1x8x128xf32>
    %6 = vector.shape_cast %5 : vector<1x8x128xf32> to vector<8x128xf32>
    %c3 = arith.constant 3 : index
    %c0_6 = arith.constant 0 : index
    %c0_7 = arith.constant 0 : index
    %7 = vector.load %arg4[%c3, %c0_6, %c0_7] : memref<4x8x128xf32, #tpu.memory_space<vmem>>, vector<1x8x128xf32>
    %8 = vector.shape_cast %7 : vector<1x8x128xf32> to vector<8x128xf32>
    %c0_i32 = arith.constant 0 : i32
    %9 = arith.cmpi eq, %arg1, %c0_i32 : i32
    %10 = arith.extui %9 : i1 to i32
    %c0_i32_8 = arith.constant 0 : i32
    %11 = arith.cmpi ne, %10, %c0_i32_8 : i32
    scf.if %11 {
      %c0_129 = arith.constant 0 : index
      %c0_130 = arith.constant 0 : index
      %c0_131 = arith.constant 0 : index
      %646 = vector.load %arg3[%c0_129, %c0_130, %c0_131] : memref<2x8x128xf32, #tpu.memory_space<vmem>>, vector<1x8x128xf32>
      %647 = vector.shape_cast %646 : vector<1x8x128xf32> to vector<8x128xf32>
      %c0_132 = arith.constant 0 : index
      %c0_133 = arith.constant 0 : index
      %c0_134 = arith.constant 0 : index
      %648 = vector.load %arg6[%c0_132, %c0_133, %c0_134] : memref<2x8x128xf32, #tpu.memory_space<vmem>>, vector<1x8x128xf32>
      %649 = vector.shape_cast %648 : vector<1x8x128xf32> to vector<8x128xf32>
      %650 = vector.shape_cast %647 : vector<8x128xf32> to vector<1x8x128xf32>
      tpu.vector_store %arg6[%c0_132, %c0_133, %c0_134], %650 {strides = array<i32>} : memref<2x8x128xf32, #tpu.memory_space<vmem>>, vector<1x8x128xf32>,
      %c1_135 = arith.constant 1 : index
      %c0_136 = arith.constant 0 : index
      %c0_137 = arith.constant 0 : index
      %651 = vector.load %arg3[%c1_135, %c0_136, %c0_137] : memref<2x8x128xf32, #tpu.memory_space<vmem>>, vector<1x8x128xf32>
      %652 = vector.shape_cast %651 : vector<1x8x128xf32> to vector<8x128xf32>
      %c1_138 = arith.constant 1 : index
      %c0_139 = arith.constant 0 : index
      %c0_140 = arith.constant 0 : index
      %653 = vector.load %arg6[%c1_138, %c0_139, %c0_140] : memref<2x8x128xf32, #tpu.memory_space<vmem>>, vector<1x8x128xf32>
      %654 = vector.shape_cast %653 : vector<1x8x128xf32> to vector<8x128xf32>
      %655 = vector.shape_cast %652 : vector<8x128xf32> to vector<1x8x128xf32>
      tpu.vector_store %arg6[%c1_138, %c0_139, %c0_140], %655 {strides = array<i32>} : memref<2x8x128xf32, #tpu.memory_space<vmem>>, vector<1x8x128xf32>,
    } else {
    }
    %c0_9 = arith.constant 0 : index
    %c0_10 = arith.constant 0 : index
    %c0_11 = arith.constant 0 : index
    %12 = vector.load %arg6[%c0_9, %c0_10, %c0_11] : memref<2x8x128xf32, #tpu.memory_space<vmem>>, vector<1x8x128xf32>
    %13 = vector.shape_cast %12 : vector<1x8x128xf32> to vector<8x128xf32>
    %c1_12 = arith.constant 1 : index
    %c0_13 = arith.constant 0 : index
    %c0_14 = arith.constant 0 : index
    %14 = vector.load %arg6[%c1_12, %c0_13, %c0_14] : memref<2x8x128xf32, #tpu.memory_space<vmem>>, vector<1x8x128xf32>
    %15 = vector.shape_cast %14 : vector<1x8x128xf32> to vector<8x128xf32>
    %c0_i32_15 = arith.constant 0 : i32
    %16 = arith.addi %0, %c0_i32_15 : i32
    %17 = arith.index_cast %16 : i32 to index
    %18 = memref.load %arg2[%17] : memref<8xf32, #tpu.memory_space<smem>>
    %cst = arith.constant 0.333333343 : f32
    %19 = arith.mulf %18, %cst : f32
    %cst_16 = arith.constant 1.250000e-01 : f32
    %20 = arith.mulf %18, %cst_16 : f32
    %21 = vector.broadcast %18 : f32 to vector<8x128xf32>
    %22 = vector.broadcast %19 : f32 to vector<8x128xf32>
    %23 = vector.broadcast %20 : f32 to vector<8x128xf32>
    %24 = arith.mulf %13, %15 : vector<8x128xf32>
    %25 = arith.mulf %2, %13 : vector<8x128xf32>
    %26 = arith.mulf %4, %24 : vector<8x128xf32>
    %27 = arith.subf %25, %26 : vector<8x128xf32>
    %28 = arith.mulf %8, %24 : vector<8x128xf32>
    %29 = arith.mulf %6, %15 : vector<8x128xf32>
    %30 = arith.subf %28, %29 : vector<8x128xf32>
    %31 = arith.mulf %22, %27 : vector<8x128xf32>
    %32 = arith.addf %13, %31 : vector<8x128xf32>
    %33 = arith.mulf %22, %30 : vector<8x128xf32>
    %34 = arith.addf %15, %33 : vector<8x128xf32>
    %35 = arith.mulf %32, %34 : vector<8x128xf32>
    %36 = arith.mulf %2, %32 : vector<8x128xf32>
    %37 = arith.mulf %4, %35 : vector<8x128xf32>
    %38 = arith.subf %36, %37 : vector<8x128xf32>
    %39 = arith.mulf %8, %35 : vector<8x128xf32>
    %40 = arith.mulf %6, %34 : vector<8x128xf32>
    %41 = arith.subf %39, %40 : vector<8x128xf32>
    %cst_17 = arith.constant 0.333333343 : f32
    %42 = vector.broadcast %cst_17 : f32 to vector<8x128xf32>
    %43 = arith.mulf %42, %27 : vector<8x128xf32>
    %44 = arith.subf %38, %43 : vector<8x128xf32>
    %45 = arith.mulf %21, %44 : vector<8x128xf32>
    %46 = arith.addf %13, %45 : vector<8x128xf32>
    %cst_18 = arith.constant 0.333333343 : f32
    %47 = vector.broadcast %cst_18 : f32 to vector<8x128xf32>
    %48 = arith.mulf %47, %30 : vector<8x128xf32>
    %49 = arith.subf %41, %48 : vector<8x128xf32>
    %50 = arith.mulf %21, %49 : vector<8x128xf32>
    %51 = arith.addf %15, %50 : vector<8x128xf32>
    %52 = arith.mulf %46, %51 : vector<8x128xf32>
    %53 = arith.mulf %2, %46 : vector<8x128xf32>
    %54 = arith.mulf %4, %52 : vector<8x128xf32>
    %55 = arith.subf %53, %54 : vector<8x128xf32>
    %56 = arith.mulf %8, %52 : vector<8x128xf32>
    %57 = arith.mulf %6, %51 : vector<8x128xf32>
    %58 = arith.subf %56, %57 : vector<8x128xf32>
    %59 = arith.subf %27, %38 : vector<8x128xf32>
    %60 = arith.addf %59, %55 : vector<8x128xf32>
    %61 = arith.mulf %21, %60 : vector<8x128xf32>
    %62 = arith.addf %13, %61 : vector<8x128xf32>
    %63 = arith.subf %30, %41 : vector<8x128xf32>
    %64 = arith.addf %63, %58 : vector<8x128xf32>
    %65 = arith.mulf %21, %64 : vector<8x128xf32>
    %66 = arith.addf %15, %65 : vector<8x128xf32>
    %67 = arith.mulf %62, %66 : vector<8x128xf32>
    %68 = arith.mulf %2, %62 : vector<8x128xf32>
    %69 = arith.mulf %4, %67 : vector<8x128xf32>
    %70 = arith.subf %68, %69 : vector<8x128xf32>
    %71 = arith.mulf %8, %67 : vector<8x128xf32>
    %72 = arith.mulf %6, %66 : vector<8x128xf32>
    %73 = arith.subf %71, %72 : vector<8x128xf32>
    %74 = arith.addf %38, %55 : vector<8x128xf32>
    %cst_19 = arith.constant 3.000000e+00 : f32
    %75 = vector.broadcast %cst_19 : f32 to vector<8x128xf32>
    %76 = arith.mulf %75, %74 : vector<8x128xf32>
    %77 = arith.addf %27, %76 : vector<8x128xf32>
    %78 = arith.addf %77, %70 : vector<8x128xf32>
    %79 = arith.mulf %23, %78 : vector<8x128xf32>
    %80 = arith.addf %13, %79 : vector<8x128xf32>
    %81 = arith.addf %41, %58 : vector<8x128xf32>
    %cst_20 = arith.constant 3.000000e+00 : f32
    %82 = vector.broadcast %cst_20 : f32 to vector<8x128xf32>
    %83 = arith.mulf %82, %81 : vector<8x128xf32>
    %84 = arith.addf %30, %83 : vector<8x128xf32>
    %85 = arith.addf %84, %73 : vector<8x128xf32>
    %86 = arith.mulf %23, %85 : vector<8x128xf32>
    %87 = arith.addf %15, %86 : vector<8x128xf32>
    %c0_21 = arith.constant 0 : index
    %c0_22 = arith.constant 0 : index
    %c0_23 = arith.constant 0 : index
    %c0_24 = arith.constant 0 : index
    %88 = vector.load %arg5[%c0_21, %c0_22, %c0_23, %c0_24] : memref<8x2x8x128xf32, #tpu.memory_space<vmem>>, vector<1x1x8x128xf32>
    %89 = vector.shape_cast %88 : vector<1x1x8x128xf32> to vector<8x128xf32>
    %90 = vector.shape_cast %80 : vector<8x128xf32> to vector<1x1x8x128xf32>
    tpu.vector_store %arg5[%c0_21, %c0_22, %c0_23, %c0_24], %90 {strides = array<i32>} : memref<8x2x8x128xf32, #tpu.memory_space<vmem>>, vector<1x1x8x128xf32>,
    %c0_25 = arith.constant 0 : index
    %c1_26 = arith.constant 1 : index
    %c0_27 = arith.constant 0 : index
    %c0_28 = arith.constant 0 : index
    %91 = vector.load %arg5[%c0_25, %c1_26, %c0_27, %c0_28] : memref<8x2x8x128xf32, #tpu.memory_space<vmem>>, vector<1x1x8x128xf32>
    %92 = vector.shape_cast %91 : vector<1x1x8x128xf32> to vector<8x128xf32>
    %93 = vector.shape_cast %87 : vector<8x128xf32> to vector<1x1x8x128xf32>
    tpu.vector_store %arg5[%c0_25, %c1_26, %c0_27, %c0_28], %93 {strides = array<i32>} : memref<8x2x8x128xf32, #tpu.memory_space<vmem>>, vector<1x1x8x128xf32>,
    %c1_i32 = arith.constant 1 : i32
    %94 = arith.addi %0, %c1_i32 : i32
    %95 = arith.index_cast %94 : i32 to index
    %96 = memref.load %arg2[%95] : memref<8xf32, #tpu.memory_space<smem>>
    %cst_29 = arith.constant 0.333333343 : f32
    %97 = arith.mulf %96, %cst_29 : f32
    %cst_30 = arith.constant 1.250000e-01 : f32
    %98 = arith.mulf %96, %cst_30 : f32
    %99 = vector.broadcast %96 : f32 to vector<8x128xf32>
    %100 = vector.broadcast %97 : f32 to vector<8x128xf32>
    %101 = vector.broadcast %98 : f32 to vector<8x128xf32>
    %102 = arith.mulf %80, %87 : vector<8x128xf32>
    %103 = arith.mulf %2, %80 : vector<8x128xf32>
    %104 = arith.mulf %4, %102 : vector<8x128xf32>
    %105 = arith.subf %103, %104 : vector<8x128xf32>
    %106 = arith.mulf %8, %102 : vector<8x128xf32>
    %107 = arith.mulf %6, %87 : vector<8x128xf32>
    %108 = arith.subf %106, %107 : vector<8x128xf32>
    %109 = arith.mulf %100, %105 : vector<8x128xf32>
    %110 = arith.addf %80, %109 : vector<8x128xf32>
    %111 = arith.mulf %100, %108 : vector<8x128xf32>
    %112 = arith.addf %87, %111 : vector<8x128xf32>
    %113 = arith.mulf %110, %112 : vector<8x128xf32>
    %114 = arith.mulf %2, %110 : vector<8x128xf32>
    %115 = arith.mulf %4, %113 : vector<8x128xf32>
    %116 = arith.subf %114, %115 : vector<8x128xf32>
    %117 = arith.mulf %8, %113 : vector<8x128xf32>
    %118 = arith.mulf %6, %112 : vector<8x128xf32>
    %119 = arith.subf %117, %118 : vector<8x128xf32>
    %cst_31 = arith.constant 0.333333343 : f32
    %120 = vector.broadcast %cst_31 : f32 to vector<8x128xf32>
    %121 = arith.mulf %120, %105 : vector<8x128xf32>
    %122 = arith.subf %116, %121 : vector<8x128xf32>
    %123 = arith.mulf %99, %122 : vector<8x128xf32>
    %124 = arith.addf %80, %123 : vector<8x128xf32>
    %cst_32 = arith.constant 0.333333343 : f32
    %125 = vector.broadcast %cst_32 : f32 to vector<8x128xf32>
    %126 = arith.mulf %125, %108 : vector<8x128xf32>
    %127 = arith.subf %119, %126 : vector<8x128xf32>
    %128 = arith.mulf %99, %127 : vector<8x128xf32>
    %129 = arith.addf %87, %128 : vector<8x128xf32>
    %130 = arith.mulf %124, %129 : vector<8x128xf32>
    %131 = arith.mulf %2, %124 : vector<8x128xf32>
    %132 = arith.mulf %4, %130 : vector<8x128xf32>
    %133 = arith.subf %131, %132 : vector<8x128xf32>
    %134 = arith.mulf %8, %130 : vector<8x128xf32>
    %135 = arith.mulf %6, %129 : vector<8x128xf32>
    %136 = arith.subf %134, %135 : vector<8x128xf32>
    %137 = arith.subf %105, %116 : vector<8x128xf32>
    %138 = arith.addf %137, %133 : vector<8x128xf32>
    %139 = arith.mulf %99, %138 : vector<8x128xf32>
    %140 = arith.addf %80, %139 : vector<8x128xf32>
    %141 = arith.subf %108, %119 : vector<8x128xf32>
    %142 = arith.addf %141, %136 : vector<8x128xf32>
    %143 = arith.mulf %99, %142 : vector<8x128xf32>
    %144 = arith.addf %87, %143 : vector<8x128xf32>
    %145 = arith.mulf %140, %144 : vector<8x128xf32>
    %146 = arith.mulf %2, %140 : vector<8x128xf32>
    %147 = arith.mulf %4, %145 : vector<8x128xf32>
    %148 = arith.subf %146, %147 : vector<8x128xf32>
    %149 = arith.mulf %8, %145 : vector<8x128xf32>
    %150 = arith.mulf %6, %144 : vector<8x128xf32>
    %151 = arith.subf %149, %150 : vector<8x128xf32>
    %152 = arith.addf %116, %133 : vector<8x128xf32>
    %cst_33 = arith.constant 3.000000e+00 : f32
    %153 = vector.broadcast %cst_33 : f32 to vector<8x128xf32>
    %154 = arith.mulf %153, %152 : vector<8x128xf32>
    %155 = arith.addf %105, %154 : vector<8x128xf32>
    %156 = arith.addf %155, %148 : vector<8x128xf32>
    %157 = arith.mulf %101, %156 : vector<8x128xf32>
    %158 = arith.addf %80, %157 : vector<8x128xf32>
    %159 = arith.addf %119, %136 : vector<8x128xf32>
    %cst_34 = arith.constant 3.000000e+00 : f32
    %160 = vector.broadcast %cst_34 : f32 to vector<8x128xf32>
    %161 = arith.mulf %160, %159 : vector<8x128xf32>
    %162 = arith.addf %108, %161 : vector<8x128xf32>
    %163 = arith.addf %162, %151 : vector<8x128xf32>
    %164 = arith.mulf %101, %163 : vector<8x128xf32>
    %165 = arith.addf %87, %164 : vector<8x128xf32>
    %c1_35 = arith.constant 1 : index
    %c0_36 = arith.constant 0 : index
    %c0_37 = arith.constant 0 : index
    %c0_38 = arith.constant 0 : index
    %166 = vector.load %arg5[%c1_35, %c0_36, %c0_37, %c0_38] : memref<8x2x8x128xf32, #tpu.memory_space<vmem>>, vector<1x1x8x128xf32>
    %167 = vector.shape_cast %166 : vector<1x1x8x128xf32> to vector<8x128xf32>
    %168 = vector.shape_cast %158 : vector<8x128xf32> to vector<1x1x8x128xf32>
    tpu.vector_store %arg5[%c1_35, %c0_36, %c0_37, %c0_38], %168 {strides = array<i32>} : memref<8x2x8x128xf32, #tpu.memory_space<vmem>>, vector<1x1x8x128xf32>,
    %c1_39 = arith.constant 1 : index
    %c1_40 = arith.constant 1 : index
    %c0_41 = arith.constant 0 : index
    %c0_42 = arith.constant 0 : index
    %169 = vector.load %arg5[%c1_39, %c1_40, %c0_41, %c0_42] : memref<8x2x8x128xf32, #tpu.memory_space<vmem>>, vector<1x1x8x128xf32>
    %170 = vector.shape_cast %169 : vector<1x1x8x128xf32> to vector<8x128xf32>
    %171 = vector.shape_cast %165 : vector<8x128xf32> to vector<1x1x8x128xf32>
    tpu.vector_store %arg5[%c1_39, %c1_40, %c0_41, %c0_42], %171 {strides = array<i32>} : memref<8x2x8x128xf32, #tpu.memory_space<vmem>>, vector<1x1x8x128xf32>,
    %c2_i32 = arith.constant 2 : i32
    %172 = arith.addi %0, %c2_i32 : i32
    %173 = arith.index_cast %172 : i32 to index
    %174 = memref.load %arg2[%173] : memref<8xf32, #tpu.memory_space<smem>>
    %cst_43 = arith.constant 0.333333343 : f32
    %175 = arith.mulf %174, %cst_43 : f32
    %cst_44 = arith.constant 1.250000e-01 : f32
    %176 = arith.mulf %174, %cst_44 : f32
    %177 = vector.broadcast %174 : f32 to vector<8x128xf32>
    %178 = vector.broadcast %175 : f32 to vector<8x128xf32>
    %179 = vector.broadcast %176 : f32 to vector<8x128xf32>
    %180 = arith.mulf %158, %165 : vector<8x128xf32>
    %181 = arith.mulf %2, %158 : vector<8x128xf32>
    %182 = arith.mulf %4, %180 : vector<8x128xf32>
    %183 = arith.subf %181, %182 : vector<8x128xf32>
    %184 = arith.mulf %8, %180 : vector<8x128xf32>
    %185 = arith.mulf %6, %165 : vector<8x128xf32>
    %186 = arith.subf %184, %185 : vector<8x128xf32>
    %187 = arith.mulf %178, %183 : vector<8x128xf32>
    %188 = arith.addf %158, %187 : vector<8x128xf32>
    %189 = arith.mulf %178, %186 : vector<8x128xf32>
    %190 = arith.addf %165, %189 : vector<8x128xf32>
    %191 = arith.mulf %188, %190 : vector<8x128xf32>
    %192 = arith.mulf %2, %188 : vector<8x128xf32>
    %193 = arith.mulf %4, %191 : vector<8x128xf32>
    %194 = arith.subf %192, %193 : vector<8x128xf32>
    %195 = arith.mulf %8, %191 : vector<8x128xf32>
    %196 = arith.mulf %6, %190 : vector<8x128xf32>
    %197 = arith.subf %195, %196 : vector<8x128xf32>
    %cst_45 = arith.constant 0.333333343 : f32
    %198 = vector.broadcast %cst_45 : f32 to vector<8x128xf32>
    %199 = arith.mulf %198, %183 : vector<8x128xf32>
    %200 = arith.subf %194, %199 : vector<8x128xf32>
    %201 = arith.mulf %177, %200 : vector<8x128xf32>
    %202 = arith.addf %158, %201 : vector<8x128xf32>
    %cst_46 = arith.constant 0.333333343 : f32
    %203 = vector.broadcast %cst_46 : f32 to vector<8x128xf32>
    %204 = arith.mulf %203, %186 : vector<8x128xf32>
    %205 = arith.subf %197, %204 : vector<8x128xf32>
    %206 = arith.mulf %177, %205 : vector<8x128xf32>
    %207 = arith.addf %165, %206 : vector<8x128xf32>
    %208 = arith.mulf %202, %207 : vector<8x128xf32>
    %209 = arith.mulf %2, %202 : vector<8x128xf32>
    %210 = arith.mulf %4, %208 : vector<8x128xf32>
    %211 = arith.subf %209, %210 : vector<8x128xf32>
    %212 = arith.mulf %8, %208 : vector<8x128xf32>
    %213 = arith.mulf %6, %207 : vector<8x128xf32>
    %214 = arith.subf %212, %213 : vector<8x128xf32>
    %215 = arith.subf %183, %194 : vector<8x128xf32>
    %216 = arith.addf %215, %211 : vector<8x128xf32>
    %217 = arith.mulf %177, %216 : vector<8x128xf32>
    %218 = arith.addf %158, %217 : vector<8x128xf32>
    %219 = arith.subf %186, %197 : vector<8x128xf32>
    %220 = arith.addf %219, %214 : vector<8x128xf32>
    %221 = arith.mulf %177, %220 : vector<8x128xf32>
    %222 = arith.addf %165, %221 : vector<8x128xf32>
    %223 = arith.mulf %218, %222 : vector<8x128xf32>
    %224 = arith.mulf %2, %218 : vector<8x128xf32>
    %225 = arith.mulf %4, %223 : vector<8x128xf32>
    %226 = arith.subf %224, %225 : vector<8x128xf32>
    %227 = arith.mulf %8, %223 : vector<8x128xf32>
    %228 = arith.mulf %6, %222 : vector<8x128xf32>
    %229 = arith.subf %227, %228 : vector<8x128xf32>
    %230 = arith.addf %194, %211 : vector<8x128xf32>
    %cst_47 = arith.constant 3.000000e+00 : f32
    %231 = vector.broadcast %cst_47 : f32 to vector<8x128xf32>
    %232 = arith.mulf %231, %230 : vector<8x128xf32>
    %233 = arith.addf %183, %232 : vector<8x128xf32>
    %234 = arith.addf %233, %226 : vector<8x128xf32>
    %235 = arith.mulf %179, %234 : vector<8x128xf32>
    %236 = arith.addf %158, %235 : vector<8x128xf32>
    %237 = arith.addf %197, %214 : vector<8x128xf32>
    %cst_48 = arith.constant 3.000000e+00 : f32
    %238 = vector.broadcast %cst_48 : f32 to vector<8x128xf32>
    %239 = arith.mulf %238, %237 : vector<8x128xf32>
    %240 = arith.addf %186, %239 : vector<8x128xf32>
    %241 = arith.addf %240, %229 : vector<8x128xf32>
    %242 = arith.mulf %179, %241 : vector<8x128xf32>
    %243 = arith.addf %165, %242 : vector<8x128xf32>
    %c2_49 = arith.constant 2 : index
    %c0_50 = arith.constant 0 : index
    %c0_51 = arith.constant 0 : index
    %c0_52 = arith.constant 0 : index
    %244 = vector.load %arg5[%c2_49, %c0_50, %c0_51, %c0_52] : memref<8x2x8x128xf32, #tpu.memory_space<vmem>>, vector<1x1x8x128xf32>
    %245 = vector.shape_cast %244 : vector<1x1x8x128xf32> to vector<8x128xf32>
    %246 = vector.shape_cast %236 : vector<8x128xf32> to vector<1x1x8x128xf32>
    tpu.vector_store %arg5[%c2_49, %c0_50, %c0_51, %c0_52], %246 {strides = array<i32>} : memref<8x2x8x128xf32, #tpu.memory_space<vmem>>, vector<1x1x8x128xf32>,
    %c2_53 = arith.constant 2 : index
    %c1_54 = arith.constant 1 : index
    %c0_55 = arith.constant 0 : index
    %c0_56 = arith.constant 0 : index
    %247 = vector.load %arg5[%c2_53, %c1_54, %c0_55, %c0_56] : memref<8x2x8x128xf32, #tpu.memory_space<vmem>>, vector<1x1x8x128xf32>
    %248 = vector.shape_cast %247 : vector<1x1x8x128xf32> to vector<8x128xf32>
    %249 = vector.shape_cast %243 : vector<8x128xf32> to vector<1x1x8x128xf32>
    tpu.vector_store %arg5[%c2_53, %c1_54, %c0_55, %c0_56], %249 {strides = array<i32>} : memref<8x2x8x128xf32, #tpu.memory_space<vmem>>, vector<1x1x8x128xf32>,
    %c3_i32 = arith.constant 3 : i32
    %250 = arith.addi %0, %c3_i32 : i32
    %251 = arith.index_cast %250 : i32 to index
    %252 = memref.load %arg2[%251] : memref<8xf32, #tpu.memory_space<smem>>
    %cst_57 = arith.constant 0.333333343 : f32
    %253 = arith.mulf %252, %cst_57 : f32
    %cst_58 = arith.constant 1.250000e-01 : f32
    %254 = arith.mulf %252, %cst_58 : f32
    %255 = vector.broadcast %252 : f32 to vector<8x128xf32>
    %256 = vector.broadcast %253 : f32 to vector<8x128xf32>
    %257 = vector.broadcast %254 : f32 to vector<8x128xf32>
    %258 = arith.mulf %236, %243 : vector<8x128xf32>
    %259 = arith.mulf %2, %236 : vector<8x128xf32>
    %260 = arith.mulf %4, %258 : vector<8x128xf32>
    %261 = arith.subf %259, %260 : vector<8x128xf32>
    %262 = arith.mulf %8, %258 : vector<8x128xf32>
    %263 = arith.mulf %6, %243 : vector<8x128xf32>
    %264 = arith.subf %262, %263 : vector<8x128xf32>
    %265 = arith.mulf %256, %261 : vector<8x128xf32>
    %266 = arith.addf %236, %265 : vector<8x128xf32>
    %267 = arith.mulf %256, %264 : vector<8x128xf32>
    %268 = arith.addf %243, %267 : vector<8x128xf32>
    %269 = arith.mulf %266, %268 : vector<8x128xf32>
    %270 = arith.mulf %2, %266 : vector<8x128xf32>
    %271 = arith.mulf %4, %269 : vector<8x128xf32>
    %272 = arith.subf %270, %271 : vector<8x128xf32>
    %273 = arith.mulf %8, %269 : vector<8x128xf32>
    %274 = arith.mulf %6, %268 : vector<8x128xf32>
    %275 = arith.subf %273, %274 : vector<8x128xf32>
    %cst_59 = arith.constant 0.333333343 : f32
    %276 = vector.broadcast %cst_59 : f32 to vector<8x128xf32>
    %277 = arith.mulf %276, %261 : vector<8x128xf32>
    %278 = arith.subf %272, %277 : vector<8x128xf32>
    %279 = arith.mulf %255, %278 : vector<8x128xf32>
    %280 = arith.addf %236, %279 : vector<8x128xf32>
    %cst_60 = arith.constant 0.333333343 : f32
    %281 = vector.broadcast %cst_60 : f32 to vector<8x128xf32>
    %282 = arith.mulf %281, %264 : vector<8x128xf32>
    %283 = arith.subf %275, %282 : vector<8x128xf32>
    %284 = arith.mulf %255, %283 : vector<8x128xf32>
    %285 = arith.addf %243, %284 : vector<8x128xf32>
    %286 = arith.mulf %280, %285 : vector<8x128xf32>
    %287 = arith.mulf %2, %280 : vector<8x128xf32>
    %288 = arith.mulf %4, %286 : vector<8x128xf32>
    %289 = arith.subf %287, %288 : vector<8x128xf32>
    %290 = arith.mulf %8, %286 : vector<8x128xf32>
    %291 = arith.mulf %6, %285 : vector<8x128xf32>
    %292 = arith.subf %290, %291 : vector<8x128xf32>
    %293 = arith.subf %261, %272 : vector<8x128xf32>
    %294 = arith.addf %293, %289 : vector<8x128xf32>
    %295 = arith.mulf %255, %294 : vector<8x128xf32>
    %296 = arith.addf %236, %295 : vector<8x128xf32>
    %297 = arith.subf %264, %275 : vector<8x128xf32>
    %298 = arith.addf %297, %292 : vector<8x128xf32>
    %299 = arith.mulf %255, %298 : vector<8x128xf32>
    %300 = arith.addf %243, %299 : vector<8x128xf32>
    %301 = arith.mulf %296, %300 : vector<8x128xf32>
    %302 = arith.mulf %2, %296 : vector<8x128xf32>
    %303 = arith.mulf %4, %301 : vector<8x128xf32>
    %304 = arith.subf %302, %303 : vector<8x128xf32>
    %305 = arith.mulf %8, %301 : vector<8x128xf32>
    %306 = arith.mulf %6, %300 : vector<8x128xf32>
    %307 = arith.subf %305, %306 : vector<8x128xf32>
    %308 = arith.addf %272, %289 : vector<8x128xf32>
    %cst_61 = arith.constant 3.000000e+00 : f32
    %309 = vector.broadcast %cst_61 : f32 to vector<8x128xf32>
    %310 = arith.mulf %309, %308 : vector<8x128xf32>
    %311 = arith.addf %261, %310 : vector<8x128xf32>
    %312 = arith.addf %311, %304 : vector<8x128xf32>
    %313 = arith.mulf %257, %312 : vector<8x128xf32>
    %314 = arith.addf %236, %313 : vector<8x128xf32>
    %315 = arith.addf %275, %292 : vector<8x128xf32>
    %cst_62 = arith.constant 3.000000e+00 : f32
    %316 = vector.broadcast %cst_62 : f32 to vector<8x128xf32>
    %317 = arith.mulf %316, %315 : vector<8x128xf32>
    %318 = arith.addf %264, %317 : vector<8x128xf32>
    %319 = arith.addf %318, %307 : vector<8x128xf32>
    %320 = arith.mulf %257, %319 : vector<8x128xf32>
    %321 = arith.addf %243, %320 : vector<8x128xf32>
    %c3_63 = arith.constant 3 : index
    %c0_64 = arith.constant 0 : index
    %c0_65 = arith.constant 0 : index
    %c0_66 = arith.constant 0 : index
    %322 = vector.load %arg5[%c3_63, %c0_64, %c0_65, %c0_66] : memref<8x2x8x128xf32, #tpu.memory_space<vmem>>, vector<1x1x8x128xf32>
    %323 = vector.shape_cast %322 : vector<1x1x8x128xf32> to vector<8x128xf32>
    %324 = vector.shape_cast %314 : vector<8x128xf32> to vector<1x1x8x128xf32>
    tpu.vector_store %arg5[%c3_63, %c0_64, %c0_65, %c0_66], %324 {strides = array<i32>} : memref<8x2x8x128xf32, #tpu.memory_space<vmem>>, vector<1x1x8x128xf32>,
    %c3_67 = arith.constant 3 : index
    %c1_68 = arith.constant 1 : index
    %c0_69 = arith.constant 0 : index
    %c0_70 = arith.constant 0 : index
    %325 = vector.load %arg5[%c3_67, %c1_68, %c0_69, %c0_70] : memref<8x2x8x128xf32, #tpu.memory_space<vmem>>, vector<1x1x8x128xf32>
    %326 = vector.shape_cast %325 : vector<1x1x8x128xf32> to vector<8x128xf32>
    %327 = vector.shape_cast %321 : vector<8x128xf32> to vector<1x1x8x128xf32>
    tpu.vector_store %arg5[%c3_67, %c1_68, %c0_69, %c0_70], %327 {strides = array<i32>} : memref<8x2x8x128xf32, #tpu.memory_space<vmem>>, vector<1x1x8x128xf32>,
    %c4_i32 = arith.constant 4 : i32
    %328 = arith.addi %0, %c4_i32 : i32
    %329 = arith.index_cast %328 : i32 to index
    %330 = memref.load %arg2[%329] : memref<8xf32, #tpu.memory_space<smem>>
    %cst_71 = arith.constant 0.333333343 : f32
    %331 = arith.mulf %330, %cst_71 : f32
    %cst_72 = arith.constant 1.250000e-01 : f32
    %332 = arith.mulf %330, %cst_72 : f32
    %333 = vector.broadcast %330 : f32 to vector<8x128xf32>
    %334 = vector.broadcast %331 : f32 to vector<8x128xf32>
    %335 = vector.broadcast %332 : f32 to vector<8x128xf32>
    %336 = arith.mulf %314, %321 : vector<8x128xf32>
    %337 = arith.mulf %2, %314 : vector<8x128xf32>
    %338 = arith.mulf %4, %336 : vector<8x128xf32>
    %339 = arith.subf %337, %338 : vector<8x128xf32>
    %340 = arith.mulf %8, %336 : vector<8x128xf32>
    %341 = arith.mulf %6, %321 : vector<8x128xf32>
    %342 = arith.subf %340, %341 : vector<8x128xf32>
    %343 = arith.mulf %334, %339 : vector<8x128xf32>
    %344 = arith.addf %314, %343 : vector<8x128xf32>
    %345 = arith.mulf %334, %342 : vector<8x128xf32>
    %346 = arith.addf %321, %345 : vector<8x128xf32>
    %347 = arith.mulf %344, %346 : vector<8x128xf32>
    %348 = arith.mulf %2, %344 : vector<8x128xf32>
    %349 = arith.mulf %4, %347 : vector<8x128xf32>
    %350 = arith.subf %348, %349 : vector<8x128xf32>
    %351 = arith.mulf %8, %347 : vector<8x128xf32>
    %352 = arith.mulf %6, %346 : vector<8x128xf32>
    %353 = arith.subf %351, %352 : vector<8x128xf32>
    %cst_73 = arith.constant 0.333333343 : f32
    %354 = vector.broadcast %cst_73 : f32 to vector<8x128xf32>
    %355 = arith.mulf %354, %339 : vector<8x128xf32>
    %356 = arith.subf %350, %355 : vector<8x128xf32>
    %357 = arith.mulf %333, %356 : vector<8x128xf32>
    %358 = arith.addf %314, %357 : vector<8x128xf32>
    %cst_74 = arith.constant 0.333333343 : f32
    %359 = vector.broadcast %cst_74 : f32 to vector<8x128xf32>
    %360 = arith.mulf %359, %342 : vector<8x128xf32>
    %361 = arith.subf %353, %360 : vector<8x128xf32>
    %362 = arith.mulf %333, %361 : vector<8x128xf32>
    %363 = arith.addf %321, %362 : vector<8x128xf32>
    %364 = arith.mulf %358, %363 : vector<8x128xf32>
    %365 = arith.mulf %2, %358 : vector<8x128xf32>
    %366 = arith.mulf %4, %364 : vector<8x128xf32>
    %367 = arith.subf %365, %366 : vector<8x128xf32>
    %368 = arith.mulf %8, %364 : vector<8x128xf32>
    %369 = arith.mulf %6, %363 : vector<8x128xf32>
    %370 = arith.subf %368, %369 : vector<8x128xf32>
    %371 = arith.subf %339, %350 : vector<8x128xf32>
    %372 = arith.addf %371, %367 : vector<8x128xf32>
    %373 = arith.mulf %333, %372 : vector<8x128xf32>
    %374 = arith.addf %314, %373 : vector<8x128xf32>
    %375 = arith.subf %342, %353 : vector<8x128xf32>
    %376 = arith.addf %375, %370 : vector<8x128xf32>
    %377 = arith.mulf %333, %376 : vector<8x128xf32>
    %378 = arith.addf %321, %377 : vector<8x128xf32>
    %379 = arith.mulf %374, %378 : vector<8x128xf32>
    %380 = arith.mulf %2, %374 : vector<8x128xf32>
    %381 = arith.mulf %4, %379 : vector<8x128xf32>
    %382 = arith.subf %380, %381 : vector<8x128xf32>
    %383 = arith.mulf %8, %379 : vector<8x128xf32>
    %384 = arith.mulf %6, %378 : vector<8x128xf32>
    %385 = arith.subf %383, %384 : vector<8x128xf32>
    %386 = arith.addf %350, %367 : vector<8x128xf32>
    %cst_75 = arith.constant 3.000000e+00 : f32
    %387 = vector.broadcast %cst_75 : f32 to vector<8x128xf32>
    %388 = arith.mulf %387, %386 : vector<8x128xf32>
    %389 = arith.addf %339, %388 : vector<8x128xf32>
    %390 = arith.addf %389, %382 : vector<8x128xf32>
    %391 = arith.mulf %335, %390 : vector<8x128xf32>
    %392 = arith.addf %314, %391 : vector<8x128xf32>
    %393 = arith.addf %353, %370 : vector<8x128xf32>
    %cst_76 = arith.constant 3.000000e+00 : f32
    %394 = vector.broadcast %cst_76 : f32 to vector<8x128xf32>
    %395 = arith.mulf %394, %393 : vector<8x128xf32>
    %396 = arith.addf %342, %395 : vector<8x128xf32>
    %397 = arith.addf %396, %385 : vector<8x128xf32>
    %398 = arith.mulf %335, %397 : vector<8x128xf32>
    %399 = arith.addf %321, %398 : vector<8x128xf32>
    %c4 = arith.constant 4 : index
    %c0_77 = arith.constant 0 : index
    %c0_78 = arith.constant 0 : index
    %c0_79 = arith.constant 0 : index
    %400 = vector.load %arg5[%c4, %c0_77, %c0_78, %c0_79] : memref<8x2x8x128xf32, #tpu.memory_space<vmem>>, vector<1x1x8x128xf32>
    %401 = vector.shape_cast %400 : vector<1x1x8x128xf32> to vector<8x128xf32>
    %402 = vector.shape_cast %392 : vector<8x128xf32> to vector<1x1x8x128xf32>
    tpu.vector_store %arg5[%c4, %c0_77, %c0_78, %c0_79], %402 {strides = array<i32>} : memref<8x2x8x128xf32, #tpu.memory_space<vmem>>, vector<1x1x8x128xf32>,
    %c4_80 = arith.constant 4 : index
    %c1_81 = arith.constant 1 : index
    %c0_82 = arith.constant 0 : index
    %c0_83 = arith.constant 0 : index
    %403 = vector.load %arg5[%c4_80, %c1_81, %c0_82, %c0_83] : memref<8x2x8x128xf32, #tpu.memory_space<vmem>>, vector<1x1x8x128xf32>
    %404 = vector.shape_cast %403 : vector<1x1x8x128xf32> to vector<8x128xf32>
    %405 = vector.shape_cast %399 : vector<8x128xf32> to vector<1x1x8x128xf32>
    tpu.vector_store %arg5[%c4_80, %c1_81, %c0_82, %c0_83], %405 {strides = array<i32>} : memref<8x2x8x128xf32, #tpu.memory_space<vmem>>, vector<1x1x8x128xf32>,
    %c5_i32 = arith.constant 5 : i32
    %406 = arith.addi %0, %c5_i32 : i32
    %407 = arith.index_cast %406 : i32 to index
    %408 = memref.load %arg2[%407] : memref<8xf32, #tpu.memory_space<smem>>
    %cst_84 = arith.constant 0.333333343 : f32
    %409 = arith.mulf %408, %cst_84 : f32
    %cst_85 = arith.constant 1.250000e-01 : f32
    %410 = arith.mulf %408, %cst_85 : f32
    %411 = vector.broadcast %408 : f32 to vector<8x128xf32>
    %412 = vector.broadcast %409 : f32 to vector<8x128xf32>
    %413 = vector.broadcast %410 : f32 to vector<8x128xf32>
    %414 = arith.mulf %392, %399 : vector<8x128xf32>
    %415 = arith.mulf %2, %392 : vector<8x128xf32>
    %416 = arith.mulf %4, %414 : vector<8x128xf32>
    %417 = arith.subf %415, %416 : vector<8x128xf32>
    %418 = arith.mulf %8, %414 : vector<8x128xf32>
    %419 = arith.mulf %6, %399 : vector<8x128xf32>
    %420 = arith.subf %418, %419 : vector<8x128xf32>
    %421 = arith.mulf %412, %417 : vector<8x128xf32>
    %422 = arith.addf %392, %421 : vector<8x128xf32>
    %423 = arith.mulf %412, %420 : vector<8x128xf32>
    %424 = arith.addf %399, %423 : vector<8x128xf32>
    %425 = arith.mulf %422, %424 : vector<8x128xf32>
    %426 = arith.mulf %2, %422 : vector<8x128xf32>
    %427 = arith.mulf %4, %425 : vector<8x128xf32>
    %428 = arith.subf %426, %427 : vector<8x128xf32>
    %429 = arith.mulf %8, %425 : vector<8x128xf32>
    %430 = arith.mulf %6, %424 : vector<8x128xf32>
    %431 = arith.subf %429, %430 : vector<8x128xf32>
    %cst_86 = arith.constant 0.333333343 : f32
    %432 = vector.broadcast %cst_86 : f32 to vector<8x128xf32>
    %433 = arith.mulf %432, %417 : vector<8x128xf32>
    %434 = arith.subf %428, %433 : vector<8x128xf32>
    %435 = arith.mulf %411, %434 : vector<8x128xf32>
    %436 = arith.addf %392, %435 : vector<8x128xf32>
    %cst_87 = arith.constant 0.333333343 : f32
    %437 = vector.broadcast %cst_87 : f32 to vector<8x128xf32>
    %438 = arith.mulf %437, %420 : vector<8x128xf32>
    %439 = arith.subf %431, %438 : vector<8x128xf32>
    %440 = arith.mulf %411, %439 : vector<8x128xf32>
    %441 = arith.addf %399, %440 : vector<8x128xf32>
    %442 = arith.mulf %436, %441 : vector<8x128xf32>
    %443 = arith.mulf %2, %436 : vector<8x128xf32>
    %444 = arith.mulf %4, %442 : vector<8x128xf32>
    %445 = arith.subf %443, %444 : vector<8x128xf32>
    %446 = arith.mulf %8, %442 : vector<8x128xf32>
    %447 = arith.mulf %6, %441 : vector<8x128xf32>
    %448 = arith.subf %446, %447 : vector<8x128xf32>
    %449 = arith.subf %417, %428 : vector<8x128xf32>
    %450 = arith.addf %449, %445 : vector<8x128xf32>
    %451 = arith.mulf %411, %450 : vector<8x128xf32>
    %452 = arith.addf %392, %451 : vector<8x128xf32>
    %453 = arith.subf %420, %431 : vector<8x128xf32>
    %454 = arith.addf %453, %448 : vector<8x128xf32>
    %455 = arith.mulf %411, %454 : vector<8x128xf32>
    %456 = arith.addf %399, %455 : vector<8x128xf32>
    %457 = arith.mulf %452, %456 : vector<8x128xf32>
    %458 = arith.mulf %2, %452 : vector<8x128xf32>
    %459 = arith.mulf %4, %457 : vector<8x128xf32>
    %460 = arith.subf %458, %459 : vector<8x128xf32>
    %461 = arith.mulf %8, %457 : vector<8x128xf32>
    %462 = arith.mulf %6, %456 : vector<8x128xf32>
    %463 = arith.subf %461, %462 : vector<8x128xf32>
    %464 = arith.addf %428, %445 : vector<8x128xf32>
    %cst_88 = arith.constant 3.000000e+00 : f32
    %465 = vector.broadcast %cst_88 : f32 to vector<8x128xf32>
    %466 = arith.mulf %465, %464 : vector<8x128xf32>
    %467 = arith.addf %417, %466 : vector<8x128xf32>
    %468 = arith.addf %467, %460 : vector<8x128xf32>
    %469 = arith.mulf %413, %468 : vector<8x128xf32>
    %470 = arith.addf %392, %469 : vector<8x128xf32>
    %471 = arith.addf %431, %448 : vector<8x128xf32>
    %cst_89 = arith.constant 3.000000e+00 : f32
    %472 = vector.broadcast %cst_89 : f32 to vector<8x128xf32>
    %473 = arith.mulf %472, %471 : vector<8x128xf32>
    %474 = arith.addf %420, %473 : vector<8x128xf32>
    %475 = arith.addf %474, %463 : vector<8x128xf32>
    %476 = arith.mulf %413, %475 : vector<8x128xf32>
    %477 = arith.addf %399, %476 : vector<8x128xf32>
    %c5 = arith.constant 5 : index
    %c0_90 = arith.constant 0 : index
    %c0_91 = arith.constant 0 : index
    %c0_92 = arith.constant 0 : index
    %478 = vector.load %arg5[%c5, %c0_90, %c0_91, %c0_92] : memref<8x2x8x128xf32, #tpu.memory_space<vmem>>, vector<1x1x8x128xf32>
    %479 = vector.shape_cast %478 : vector<1x1x8x128xf32> to vector<8x128xf32>
    %480 = vector.shape_cast %470 : vector<8x128xf32> to vector<1x1x8x128xf32>
    tpu.vector_store %arg5[%c5, %c0_90, %c0_91, %c0_92], %480 {strides = array<i32>} : memref<8x2x8x128xf32, #tpu.memory_space<vmem>>, vector<1x1x8x128xf32>,
    %c5_93 = arith.constant 5 : index
    %c1_94 = arith.constant 1 : index
    %c0_95 = arith.constant 0 : index
    %c0_96 = arith.constant 0 : index
    %481 = vector.load %arg5[%c5_93, %c1_94, %c0_95, %c0_96] : memref<8x2x8x128xf32, #tpu.memory_space<vmem>>, vector<1x1x8x128xf32>
    %482 = vector.shape_cast %481 : vector<1x1x8x128xf32> to vector<8x128xf32>
    %483 = vector.shape_cast %477 : vector<8x128xf32> to vector<1x1x8x128xf32>
    tpu.vector_store %arg5[%c5_93, %c1_94, %c0_95, %c0_96], %483 {strides = array<i32>} : memref<8x2x8x128xf32, #tpu.memory_space<vmem>>, vector<1x1x8x128xf32>,
    %c6_i32 = arith.constant 6 : i32
    %484 = arith.addi %0, %c6_i32 : i32
    %485 = arith.index_cast %484 : i32 to index
    %486 = memref.load %arg2[%485] : memref<8xf32, #tpu.memory_space<smem>>
    %cst_97 = arith.constant 0.333333343 : f32
    %487 = arith.mulf %486, %cst_97 : f32
    %cst_98 = arith.constant 1.250000e-01 : f32
    %488 = arith.mulf %486, %cst_98 : f32
    %489 = vector.broadcast %486 : f32 to vector<8x128xf32>
    %490 = vector.broadcast %487 : f32 to vector<8x128xf32>
    %491 = vector.broadcast %488 : f32 to vector<8x128xf32>
    %492 = arith.mulf %470, %477 : vector<8x128xf32>
    %493 = arith.mulf %2, %470 : vector<8x128xf32>
    %494 = arith.mulf %4, %492 : vector<8x128xf32>
    %495 = arith.subf %493, %494 : vector<8x128xf32>
    %496 = arith.mulf %8, %492 : vector<8x128xf32>
    %497 = arith.mulf %6, %477 : vector<8x128xf32>
    %498 = arith.subf %496, %497 : vector<8x128xf32>
    %499 = arith.mulf %490, %495 : vector<8x128xf32>
    %500 = arith.addf %470, %499 : vector<8x128xf32>
    %501 = arith.mulf %490, %498 : vector<8x128xf32>
    %502 = arith.addf %477, %501 : vector<8x128xf32>
    %503 = arith.mulf %500, %502 : vector<8x128xf32>
    %504 = arith.mulf %2, %500 : vector<8x128xf32>
    %505 = arith.mulf %4, %503 : vector<8x128xf32>
    %506 = arith.subf %504, %505 : vector<8x128xf32>
    %507 = arith.mulf %8, %503 : vector<8x128xf32>
    %508 = arith.mulf %6, %502 : vector<8x128xf32>
    %509 = arith.subf %507, %508 : vector<8x128xf32>
    %cst_99 = arith.constant 0.333333343 : f32
    %510 = vector.broadcast %cst_99 : f32 to vector<8x128xf32>
    %511 = arith.mulf %510, %495 : vector<8x128xf32>
    %512 = arith.subf %506, %511 : vector<8x128xf32>
    %513 = arith.mulf %489, %512 : vector<8x128xf32>
    %514 = arith.addf %470, %513 : vector<8x128xf32>
    %cst_100 = arith.constant 0.333333343 : f32
    %515 = vector.broadcast %cst_100 : f32 to vector<8x128xf32>
    %516 = arith.mulf %515, %498 : vector<8x128xf32>
    %517 = arith.subf %509, %516 : vector<8x128xf32>
    %518 = arith.mulf %489, %517 : vector<8x128xf32>
    %519 = arith.addf %477, %518 : vector<8x128xf32>
    %520 = arith.mulf %514, %519 : vector<8x128xf32>
    %521 = arith.mulf %2, %514 : vector<8x128xf32>
    %522 = arith.mulf %4, %520 : vector<8x128xf32>
    %523 = arith.subf %521, %522 : vector<8x128xf32>
    %524 = arith.mulf %8, %520 : vector<8x128xf32>
    %525 = arith.mulf %6, %519 : vector<8x128xf32>
    %526 = arith.subf %524, %525 : vector<8x128xf32>
    %527 = arith.subf %495, %506 : vector<8x128xf32>
    %528 = arith.addf %527, %523 : vector<8x128xf32>
    %529 = arith.mulf %489, %528 : vector<8x128xf32>
    %530 = arith.addf %470, %529 : vector<8x128xf32>
    %531 = arith.subf %498, %509 : vector<8x128xf32>
    %532 = arith.addf %531, %526 : vector<8x128xf32>
    %533 = arith.mulf %489, %532 : vector<8x128xf32>
    %534 = arith.addf %477, %533 : vector<8x128xf32>
    %535 = arith.mulf %530, %534 : vector<8x128xf32>
    %536 = arith.mulf %2, %530 : vector<8x128xf32>
    %537 = arith.mulf %4, %535 : vector<8x128xf32>
    %538 = arith.subf %536, %537 : vector<8x128xf32>
    %539 = arith.mulf %8, %535 : vector<8x128xf32>
    %540 = arith.mulf %6, %534 : vector<8x128xf32>
    %541 = arith.subf %539, %540 : vector<8x128xf32>
    %542 = arith.addf %506, %523 : vector<8x128xf32>
    %cst_101 = arith.constant 3.000000e+00 : f32
    %543 = vector.broadcast %cst_101 : f32 to vector<8x128xf32>
    %544 = arith.mulf %543, %542 : vector<8x128xf32>
    %545 = arith.addf %495, %544 : vector<8x128xf32>
    %546 = arith.addf %545, %538 : vector<8x128xf32>
    %547 = arith.mulf %491, %546 : vector<8x128xf32>
    %548 = arith.addf %470, %547 : vector<8x128xf32>
    %549 = arith.addf %509, %526 : vector<8x128xf32>
    %cst_102 = arith.constant 3.000000e+00 : f32
    %550 = vector.broadcast %cst_102 : f32 to vector<8x128xf32>
    %551 = arith.mulf %550, %549 : vector<8x128xf32>
    %552 = arith.addf %498, %551 : vector<8x128xf32>
    %553 = arith.addf %552, %541 : vector<8x128xf32>
    %554 = arith.mulf %491, %553 : vector<8x128xf32>
    %555 = arith.addf %477, %554 : vector<8x128xf32>
    %c6 = arith.constant 6 : index
    %c0_103 = arith.constant 0 : index
    %c0_104 = arith.constant 0 : index
    %c0_105 = arith.constant 0 : index
    %556 = vector.load %arg5[%c6, %c0_103, %c0_104, %c0_105] : memref<8x2x8x128xf32, #tpu.memory_space<vmem>>, vector<1x1x8x128xf32>
    %557 = vector.shape_cast %556 : vector<1x1x8x128xf32> to vector<8x128xf32>
    %558 = vector.shape_cast %548 : vector<8x128xf32> to vector<1x1x8x128xf32>
    tpu.vector_store %arg5[%c6, %c0_103, %c0_104, %c0_105], %558 {strides = array<i32>} : memref<8x2x8x128xf32, #tpu.memory_space<vmem>>, vector<1x1x8x128xf32>,
    %c6_106 = arith.constant 6 : index
    %c1_107 = arith.constant 1 : index
    %c0_108 = arith.constant 0 : index
    %c0_109 = arith.constant 0 : index
    %559 = vector.load %arg5[%c6_106, %c1_107, %c0_108, %c0_109] : memref<8x2x8x128xf32, #tpu.memory_space<vmem>>, vector<1x1x8x128xf32>
    %560 = vector.shape_cast %559 : vector<1x1x8x128xf32> to vector<8x128xf32>
    %561 = vector.shape_cast %555 : vector<8x128xf32> to vector<1x1x8x128xf32>
    tpu.vector_store %arg5[%c6_106, %c1_107, %c0_108, %c0_109], %561 {strides = array<i32>} : memref<8x2x8x128xf32, #tpu.memory_space<vmem>>, vector<1x1x8x128xf32>,
    %c7_i32 = arith.constant 7 : i32
    %562 = arith.addi %0, %c7_i32 : i32
    %563 = arith.index_cast %562 : i32 to index
    %564 = memref.load %arg2[%563] : memref<8xf32, #tpu.memory_space<smem>>
    %cst_110 = arith.constant 0.333333343 : f32
    %565 = arith.mulf %564, %cst_110 : f32
    %cst_111 = arith.constant 1.250000e-01 : f32
    %566 = arith.mulf %564, %cst_111 : f32
    %567 = vector.broadcast %564 : f32 to vector<8x128xf32>
    %568 = vector.broadcast %565 : f32 to vector<8x128xf32>
    %569 = vector.broadcast %566 : f32 to vector<8x128xf32>
    %570 = arith.mulf %548, %555 : vector<8x128xf32>
    %571 = arith.mulf %2, %548 : vector<8x128xf32>
    %572 = arith.mulf %4, %570 : vector<8x128xf32>
    %573 = arith.subf %571, %572 : vector<8x128xf32>
    %574 = arith.mulf %8, %570 : vector<8x128xf32>
    %575 = arith.mulf %6, %555 : vector<8x128xf32>
    %576 = arith.subf %574, %575 : vector<8x128xf32>
    %577 = arith.mulf %568, %573 : vector<8x128xf32>
    %578 = arith.addf %548, %577 : vector<8x128xf32>
    %579 = arith.mulf %568, %576 : vector<8x128xf32>
    %580 = arith.addf %555, %579 : vector<8x128xf32>
    %581 = arith.mulf %578, %580 : vector<8x128xf32>
    %582 = arith.mulf %2, %578 : vector<8x128xf32>
    %583 = arith.mulf %4, %581 : vector<8x128xf32>
    %584 = arith.subf %582, %583 : vector<8x128xf32>
    %585 = arith.mulf %8, %581 : vector<8x128xf32>
    %586 = arith.mulf %6, %580 : vector<8x128xf32>
    %587 = arith.subf %585, %586 : vector<8x128xf32>
    %cst_112 = arith.constant 0.333333343 : f32
    %588 = vector.broadcast %cst_112 : f32 to vector<8x128xf32>
    %589 = arith.mulf %588, %573 : vector<8x128xf32>
    %590 = arith.subf %584, %589 : vector<8x128xf32>
    %591 = arith.mulf %567, %590 : vector<8x128xf32>
    %592 = arith.addf %548, %591 : vector<8x128xf32>
    %cst_113 = arith.constant 0.333333343 : f32
    %593 = vector.broadcast %cst_113 : f32 to vector<8x128xf32>
    %594 = arith.mulf %593, %576 : vector<8x128xf32>
    %595 = arith.subf %587, %594 : vector<8x128xf32>
    %596 = arith.mulf %567, %595 : vector<8x128xf32>
    %597 = arith.addf %555, %596 : vector<8x128xf32>
    %598 = arith.mulf %592, %597 : vector<8x128xf32>
    %599 = arith.mulf %2, %592 : vector<8x128xf32>
    %600 = arith.mulf %4, %598 : vector<8x128xf32>
    %601 = arith.subf %599, %600 : vector<8x128xf32>
    %602 = arith.mulf %8, %598 : vector<8x128xf32>
    %603 = arith.mulf %6, %597 : vector<8x128xf32>
    %604 = arith.subf %602, %603 : vector<8x128xf32>
    %605 = arith.subf %573, %584 : vector<8x128xf32>
    %606 = arith.addf %605, %601 : vector<8x128xf32>
    %607 = arith.mulf %567, %606 : vector<8x128xf32>
    %608 = arith.addf %548, %607 : vector<8x128xf32>
    %609 = arith.subf %576, %587 : vector<8x128xf32>
    %610 = arith.addf %609, %604 : vector<8x128xf32>
    %611 = arith.mulf %567, %610 : vector<8x128xf32>
    %612 = arith.addf %555, %611 : vector<8x128xf32>
    %613 = arith.mulf %608, %612 : vector<8x128xf32>
    %614 = arith.mulf %2, %608 : vector<8x128xf32>
    %615 = arith.mulf %4, %613 : vector<8x128xf32>
    %616 = arith.subf %614, %615 : vector<8x128xf32>
    %617 = arith.mulf %8, %613 : vector<8x128xf32>
    %618 = arith.mulf %6, %612 : vector<8x128xf32>
    %619 = arith.subf %617, %618 : vector<8x128xf32>
    %620 = arith.addf %584, %601 : vector<8x128xf32>
    %cst_114 = arith.constant 3.000000e+00 : f32
    %621 = vector.broadcast %cst_114 : f32 to vector<8x128xf32>
    %622 = arith.mulf %621, %620 : vector<8x128xf32>
    %623 = arith.addf %573, %622 : vector<8x128xf32>
    %624 = arith.addf %623, %616 : vector<8x128xf32>
    %625 = arith.mulf %569, %624 : vector<8x128xf32>
    %626 = arith.addf %548, %625 : vector<8x128xf32>
    %627 = arith.addf %587, %604 : vector<8x128xf32>
    %cst_115 = arith.constant 3.000000e+00 : f32
    %628 = vector.broadcast %cst_115 : f32 to vector<8x128xf32>
    %629 = arith.mulf %628, %627 : vector<8x128xf32>
    %630 = arith.addf %576, %629 : vector<8x128xf32>
    %631 = arith.addf %630, %619 : vector<8x128xf32>
    %632 = arith.mulf %569, %631 : vector<8x128xf32>
    %633 = arith.addf %555, %632 : vector<8x128xf32>
    %c7 = arith.constant 7 : index
    %c0_116 = arith.constant 0 : index
    %c0_117 = arith.constant 0 : index
    %c0_118 = arith.constant 0 : index
    %634 = vector.load %arg5[%c7, %c0_116, %c0_117, %c0_118] : memref<8x2x8x128xf32, #tpu.memory_space<vmem>>, vector<1x1x8x128xf32>
    %635 = vector.shape_cast %634 : vector<1x1x8x128xf32> to vector<8x128xf32>
    %636 = vector.shape_cast %626 : vector<8x128xf32> to vector<1x1x8x128xf32>
    tpu.vector_store %arg5[%c7, %c0_116, %c0_117, %c0_118], %636 {strides = array<i32>} : memref<8x2x8x128xf32, #tpu.memory_space<vmem>>, vector<1x1x8x128xf32>,
    %c7_119 = arith.constant 7 : index
    %c1_120 = arith.constant 1 : index
    %c0_121 = arith.constant 0 : index
    %c0_122 = arith.constant 0 : index
    %637 = vector.load %arg5[%c7_119, %c1_120, %c0_121, %c0_122] : memref<8x2x8x128xf32, #tpu.memory_space<vmem>>, vector<1x1x8x128xf32>
    %638 = vector.shape_cast %637 : vector<1x1x8x128xf32> to vector<8x128xf32>
    %639 = vector.shape_cast %633 : vector<8x128xf32> to vector<1x1x8x128xf32>
    tpu.vector_store %arg5[%c7_119, %c1_120, %c0_121, %c0_122], %639 {strides = array<i32>} : memref<8x2x8x128xf32, #tpu.memory_space<vmem>>, vector<1x1x8x128xf32>,
    %c0_123 = arith.constant 0 : index
    %c0_124 = arith.constant 0 : index
    %c0_125 = arith.constant 0 : index
    %640 = vector.load %arg6[%c0_123, %c0_124, %c0_125] : memref<2x8x128xf32, #tpu.memory_space<vmem>>, vector<1x8x128xf32>
    %641 = vector.shape_cast %640 : vector<1x8x128xf32> to vector<8x128xf32>
    %642 = vector.shape_cast %626 : vector<8x128xf32> to vector<1x8x128xf32>
    tpu.vector_store %arg6[%c0_123, %c0_124, %c0_125], %642 {strides = array<i32>} : memref<2x8x128xf32, #tpu.memory_space<vmem>>, vector<1x8x128xf32>,
    %c1_126 = arith.constant 1 : index
    %c0_127 = arith.constant 0 : index
    %c0_128 = arith.constant 0 : index
    %643 = vector.load %arg6[%c1_126, %c0_127, %c0_128] : memref<2x8x128xf32, #tpu.memory_space<vmem>>, vector<1x8x128xf32>
    %644 = vector.shape_cast %643 : vector<1x8x128xf32> to vector<8x128xf32>
    %645 = vector.shape_cast %633 : vector<8x128xf32> to vector<1x8x128xf32>
    tpu.vector_store %arg6[%c1_126, %c0_127, %c0_128], %645 {strides = array<i32>} : memref<2x8x128xf32, #tpu.memory_space<vmem>>, vector<1x8x128xf32>,
    return
  }
  func.func @transform_0(%arg0: i32, %arg1: i32, %arg2: memref<8xf32, #tpu.memory_space<smem>>) -> (i32, i32, i32) {
    %c0_i32 = arith.constant 0 : i32
    %c0_i32_0 = arith.constant 0 : i32
    %c0_i32_1 = arith.constant 0 : i32
    return %c0_i32, %arg0, %c0_i32_0 : i32, i32, i32
  }
  func.func @transform_1(%arg0: i32, %arg1: i32, %arg2: memref<8xf32, #tpu.memory_space<smem>>) -> (i32, i32, i32) {
    %c0_i32 = arith.constant 0 : i32
    %c0_i32_0 = arith.constant 0 : i32
    %c0_i32_1 = arith.constant 0 : i32
    return %c0_i32, %arg0, %c0_i32_0 : i32, i32, i32
  }
  func.func @transform_2(%arg0: i32, %arg1: i32, %arg2: memref<8xf32, #tpu.memory_space<smem>>) -> (i32, i32, i32, i32) {
    %c0_i32 = arith.constant 0 : i32
    %c0_i32_0 = arith.constant 0 : i32
    %c0_i32_1 = arith.constant 0 : i32
    return %arg1, %c0_i32, %arg0, %c0_i32_0 : i32, i32, i32, i32
  }
}

</mosaic_0001>

<bundles_post_ra>
// kernel: tpu_custom_call.1
= control target key start
LH: loop header
LB: loop body
LE: loop exit
PB: predicated region body
PF: predicated region fallthrough
CT: control target
= control target key end

     0   :  { %s1147_s0 = inlined_call_operand.hbm [shape: f32[8], index: 0, kind: input, shape index: {}]   ;;  %s1148_s1 = inlined_call_operand.hbm [shape: f32[2,8,128], index: 1, kind: input, shape index: {}]   ;;  %s1149_s2 = inlined_call_operand.hbm [shape: f32[4,8,128], index: 2, kind: input, shape index: {}]   ;;  %s1150_s3 = inlined_call_operand.hbm [shape: f32[8,2,8,128], index: 3, kind: output, shape index: {}]  }
   0x1   :  { %s669_s14 = scalar_lea.hbm %s1147_s0, 16 }
   0x2   :  { %p670_p0 = scmp.ne.s32.totalorder %s1147_s0, %s669_s14  ;;  %p673_p1 = scmp.lt.u32.totalorder %s669_s14, %s1147_s0 }
   0x4   :  { %p675_p2 = pnand %p673_p1, %p670_p0 }
   0x6   :  { %678 = shalt.err (!%p675_p2)  }
   0x7   :  { %s753_s19 = smov [#allocation4]  }
   0x8   :  { %9 = dma.hbm_to_smem %s1147_s0, 16, %s753_s19, [#allocation3] }
   0x9   :  { %745 = dma.done.wait [#allocation3], 16 }
   0xa   :  { %746 = vsyncadd [#allocation3], 4294967280 }
   0xb   :  { %11 = sfence }
   0xc   :  { %12 = vsyncpa [#allocation6], 0 }
   0xd   :  { %13 = vsyncpa [#allocation9], 0 }
   0xe   :  { %14 = vsyncpa [#allocation7], 0  ;;  %s754_s22 = smov [#allocation5]   ;;  %s679_s26 = scalar_lea.hbm %s1148_s1, 256 }
   0xf   :  { %s20_s23 = sshll.u32 %s754_s22, 4  ;;  %p680_p3 = scmp.ne.s32.totalorder %s1148_s1, %s679_s26  ;;  %s21_s23 = int_to_ptr.vmem [resolvable:$true] %s20_s23 }
  0x10   :  { %p683_p4 = scmp.lt.u32.totalorder %s679_s26, %s1148_s1 }
  0x12   :  { %p685_p5 = pnand %p683_p4, %p680_p3 }
  0x14   :  { %688 = shalt.err (!%p685_p5)
}
  0x15   :  { %s689_s0 = scalar_lea.vmem %s21_s23, 256  ;;  %p694_p7 = scmp.lt.s32.totalorder %s21_s23, %s21_s23 }
  0x16   :  { %p690_p6 = scmp.ne.s32.totalorder %s21_s23, %s689_s0  ;;  %p695_p8 = scmp.lt.s32.totalorder %s689_s0, %s689_s0 }
  0x18   :  { %p696_p9 = por %p695_p8, %p694_p7 }
  0x1a   :  { %p697_p10 = pnand %p696_p9, %p690_p6 }
  0x1c   :  { %700 = shalt.err (!%p697_p10)
}
  0x1d   :  { %s755_s4 = smov 128   ;;  %s756_s5 = smov 8  }
  0x1e   :  { %26 = dma.hbm_to_vmem [thread:$0]  %s1148_s1, 256, %s21_s23, [#allocation6], %s755_s4, %s755_s4, %s756_s5  }
  0x1f   :  { %s757_s8 = smov [#allocation8]   ;;  %s701_s12 = scalar_lea.hbm %s1149_s2, 512 }
  0x20   :  { %s32_s9 = sshll.u32 %s757_s8, 4  ;;  %p702_p11 = scmp.ne.s32.totalorder %s1149_s2, %s701_s12  ;;  %s33_s9 = int_to_ptr.vmem [resolvable:$true] %s32_s9 }
  0x21   :  { %p705_p12 = scmp.lt.u32.totalorder %s701_s12, %s1149_s2 }
  0x23   :  { %p707_p13 = pnand %p705_p12, %p702_p11 }
  0x25   :  { %710 = shalt.err (!%p707_p13)
}
  0x26   :  { %s711_s17 = scalar_lea.vmem %s33_s9, 512  ;;  %p716_p1 = scmp.lt.s32.totalorder %s33_s9, %s33_s9 }
  0x27   :  { %p712_p0 = scmp.ne.s32.totalorder %s33_s9, %s711_s17  ;;  %p717_p2 = scmp.lt.s32.totalorder %s711_s17, %s711_s17 }
  0x29   :  { %p718_p3 = por %p717_p2, %p716_p1 }
  0x2b   :  { %p719_p4 = pnand %p718_p3, %p712_p0 }
  0x2d   :  { %722 = shalt.err (!%p719_p4)
}
  0x2e   :  { %38 = dma.hbm_to_vmem [thread:$0]  %s1149_s2, 512, %s33_s9, [#allocation9], %s755_s4, %s755_s4, %s756_s5  }
  0x2f   :  { %747 = dma.done.wait [#allocation6], 256  }
  0x30   :  { %748 = vsyncadd [#allocation6], 4294967040 }
  0x31   :  { %749 = dma.done.wait [#allocation9], 512  }
  0x32   :  { %750 = vsyncadd [#allocation9], 4294966784  ;;  %s821_s19 = sld [smem:[#allocation4]]  ;;  %v823_v0 = vld [vmem:[#allocation8] sm:$0xff]  ;;  %v825_v1 = vld [vmem:[#allocation8 + $0x8] sm:$0xff]  ;;  %s864_s21 = sld [smem:[#allocation4 + $0x1]] }
  0x33   :  { %v827_v2 = vld [vmem:[#allocation8 + $0x10] sm:$0xff]  ;;  %v829_v3 = vld [vmem:[#allocation8 + $0x18] sm:$0xff]  ;;  %s903_s24 = sld [smem:[#allocation4 + $0x2]]  ;;  %s942_s27 = sld [smem:[#allocation4 + $0x3]] }
  0x34   :  { %v831_v4 = vld [vmem:[#allocation5] sm:$0xff]  ;;  %v833_v5 = vld [vmem:[#allocation5 + $0x8] sm:$0xff]  ;;  %s981_s30 = sld [smem:[#allocation4 + $0x4]]  ;;  %s1020_s7 = sld [smem:[#allocation4 + $0x5]] }
  0x35   :  { %v72_v6 = vmul.f32 %v833_v5, %v831_v4  ;;  %v73_v7 = vmul.f32 %v831_v4, %v823_v0  ;;  %v77_v8 = vmul.f32 %v833_v5, %v827_v2  ;;  %s1059_s10 = sld [smem:[#allocation4 + $0x6]]  ;;  %s1098_s13 = sld [smem:[#allocation4 + $0x7]] }
  0x36   :  { %s758_s16 = smov [#allocation10]  }
  0x37   :  { %v74_v9 = vmul.f32 %v72_v6, %v825_v1  ;;  %v76_v10 = vmul.f32 %v72_v6, %v829_v3  ;;  %s639_s17 = sshll.u32 %s758_s16, 4  ;;  %s640_s17 = int_to_ptr.vmem [resolvable:$true] %s639_s17 }
  0x38   :  { %s67_s2 = smul.f32 0.33333334, %s821_s19  ;;  %v69_v27 = vstv %s821_s19  ;;  %s723_s1 = scalar_lea.vmem %s640_s17, 2048 }
  0x39   :  { %v75_v12 = vsub.f32 %v73_v7, %v74_v9  ;;  %v78_v13 = vsub.f32 %v76_v10, %v77_v8  ;;  %s68_s20 = smul.f32 0.125, %s821_s19  ;;  %p724_p5 = scmp.ne.s32.totalorder %s640_s17, %s723_s1 }
  0x3a   :  { %v70_v11 = vstv %s67_s2  ;;  %s137_s22 = smul.f32 0.33333334, %s864_s21  ;;  %p728_p6 = scmp.lt.s32.totalorder %s640_s17, %s640_s17 }
  0x3b   :  { %v79_v14 = vmul.f32 %v75_v12, %v70_v11  ;;  %v81_v15 = vmul.f32 %v78_v13, %v70_v11  ;;  %v90_v23 = vmul.f32 0.33333334, %v75_v12  ;;  %v94_v24 = vmul.f32 0.33333334, %v78_v13  ;;  %s138_s23 = smul.f32 0.125, %s864_s21  ;;  %p729_p7 = scmp.lt.s32.totalorder %s723_s1, %s723_s1 }
  0x3c   :  { %v71_v62 = vstv %s68_s20  ;;  %s208_s25 = smul.f32 0.33333334, %s903_s24 }
  0x3d   :  { %v80_v16 = vadd.f32 %v79_v14, %v831_v4  ;;  %v82_v17 = vadd.f32 %v81_v15, %v833_v5  ;;  %s209_s26 = smul.f32 0.125, %s903_s24  ;;  %p730_p8 = por %p729_p7, %p728_p6 }
  0x3e   :  { %s279_s28 = smul.f32 0.33333334, %s942_s27 }
  0x3f   :  { %v83_v18 = vmul.f32 %v82_v17, %v80_v16  ;;  %v84_v19 = vmul.f32 %v80_v16, %v823_v0  ;;  %v88_v20 = vmul.f32 %v82_v17, %v827_v2  ;;  %s280_s29 = smul.f32 0.125, %s942_s27  ;;  %p731_p9 = pnand %p730_p8, %p724_p5 }
  0x40   :  { %s350_s0 = smul.f32 0.33333334, %s981_s30 }
  0x41   :  { %v85_v21 = vmul.f32 %v83_v18, %v825_v1  ;;  %v87_v22 = vmul.f32 %v83_v18, %v829_v3  ;;  %s351_s6 = smul.f32 0.125, %s981_s30 }
  0x42   :  { %s421_s8 = smul.f32 0.33333334, %s1020_s7 }
  0x43   :  { %v86_v25 = vsub.f32 %v84_v19, %v85_v21  ;;  %v89_v26 = vsub.f32 %v87_v22, %v88_v20  ;;  %s422_s9 = smul.f32 0.125, %s1020_s7 }
  0x44   :  { %s492_s11 = smul.f32 0.33333334, %s1059_s10 }
  0x45   :  { %v91_v28 = vsub.f32 %v86_v25, %v90_v23  ;;  %v95_v29 = vsub.f32 %v89_v26, %v94_v24  ;;  %v105_v39 = vsub.f32 %v75_v12, %v86_v25  ;;  %v109_v40 = vsub.f32 %v78_v13, %v89_v26  ;;  %s493_s12 = smul.f32 0.125, %s1059_s10 }
  0x46   :  { %s563_s14 = smul.f32 0.33333334, %s1098_s13 }
  0x47   :  { %v92_v30 = vmul.f32 %v91_v28, %v69_v27  ;;  %v96_v31 = vmul.f32 %v95_v29, %v69_v27  ;;  %s564_s15 = smul.f32 0.125, %s1098_s13 }
  0x49   :  { %v93_v32 = vadd.f32 %v92_v30, %v831_v4  ;;  %v97_v33 = vadd.f32 %v96_v31, %v833_v5  ;;  %v139_v30 = vstv %s864_s21 }
  0x4b   :  { %v98_v34 = vmul.f32 %v97_v33, %v93_v32  ;;  %v99_v35 = vmul.f32 %v93_v32, %v823_v0  ;;  %v103_v36 = vmul.f32 %v97_v33, %v827_v2 }
  0x4d   :  { %v100_v37 = vmul.f32 %v98_v34, %v825_v1  ;;  %v102_v38 = vmul.f32 %v98_v34, %v829_v3 }
  0x4f   :  { %v101_v41 = vsub.f32 %v99_v35, %v100_v37  ;;  %v104_v42 = vsub.f32 %v102_v38, %v103_v36 }
  0x51   :  { %v106_v43 = vadd.f32 %v105_v39, %v101_v41  ;;  %v110_v44 = vadd.f32 %v109_v40, %v104_v42  ;;  %v120_v45 = vadd.f32 %v101_v41, %v86_v25  ;;  %v126_v46 = vadd.f32 %v104_v42, %v89_v26 }
  0x53   :  { %v107_v47 = vmul.f32 %v106_v43, %v69_v27  ;;  %v111_v48 = vmul.f32 %v110_v44, %v69_v27  ;;  %v121_v51 = vmul.f32 3.0, %v120_v45  ;;  %v127_v52 = vmul.f32 3.0, %v126_v46 }
  0x55   :  { %v108_v49 = vadd.f32 %v107_v47, %v831_v4  ;;  %v112_v50 = vadd.f32 %v111_v48, %v833_v5  ;;  %v122_v57 = vadd.f32 %v121_v51, %v75_v12  ;;  %v128_v59 = vadd.f32 %v127_v52, %v78_v13 }
  0x57   :  { %v113_v53 = vmul.f32 %v112_v50, %v108_v49  ;;  %v114_v54 = vmul.f32 %v108_v49, %v823_v0  ;;  %v118_v55 = vmul.f32 %v112_v50, %v827_v2 }
  0x59   :  { %v115_v56 = vmul.f32 %v113_v53, %v825_v1  ;;  %v117_v58 = vmul.f32 %v113_v53, %v829_v3 }
  0x5b   :  { %v116_v60 = vsub.f32 %v114_v54, %v115_v56  ;;  %v119_v61 = vsub.f32 %v117_v58, %v118_v55 }
  0x5d   :  { %v123_v63 = vadd.f32 %v122_v57, %v116_v60  ;;  %v129_v6 = vadd.f32 %v128_v59, %v119_v61 }
  0x5f   :  { %v124_v7 = vmul.f32 %v123_v63, %v71_v62  ;;  %v130_v8 = vmul.f32 %v129_v6, %v71_v62 }
  0x61   :  { %v867_v9 = vadd.f32 %v124_v7, %v831_v4  ;;  %v870_v10 = vadd.f32 %v130_v8, %v833_v5  ;;  %v140_v5 = vstv %s137_s22  ;;  %v141_v7 = vstv %s138_s23 }
  0x63   :  { %132 = vst [vmem:[#allocation10] sm:$0xff] %v867_v9  ;;  %134 = vst [vmem:[#allocation10 + $0x8] sm:$0xff] %v870_v10  ;;  %v142_v11 = vmul.f32 %v870_v10, %v867_v9  ;;  %v143_v12 = vmul.f32 %v867_v9, %v823_v0  ;;  %v147_v13 = vmul.f32 %v870_v10, %v827_v2 }
  0x65   :  { %v144_v4 = vmul.f32 %v142_v11, %v825_v1  ;;  %v146_v14 = vmul.f32 %v142_v11, %v829_v3 }
  0x67   :  { %v145_v15 = vsub.f32 %v143_v12, %v144_v4  ;;  %v148_v16 = vsub.f32 %v146_v14, %v147_v13 }
  0x69   :  { %v149_v17 = vmul.f32 %v145_v15, %v140_v5  ;;  %v151_v18 = vmul.f32 %v148_v16, %v140_v5  ;;  %v160_v26 = vmul.f32 0.33333334, %v145_v15  ;;  %v164_v27 = vmul.f32 0.33333334, %v148_v16 }
  0x6b   :  { %v150_v19 = vadd.f32 %v149_v17, %v867_v9  ;;  %v152_v20 = vadd.f32 %v151_v18, %v870_v10 }
  0x6d   :  { %v153_v21 = vmul.f32 %v152_v20, %v150_v19  ;;  %v154_v22 = vmul.f32 %v150_v19, %v823_v0  ;;  %v158_v23 = vmul.f32 %v152_v20, %v827_v2 }
  0x6f   :  { %v155_v24 = vmul.f32 %v153_v21, %v825_v1  ;;  %v157_v25 = vmul.f32 %v153_v21, %v829_v3 }
  0x71   :  { %v156_v28 = vsub.f32 %v154_v22, %v155_v24  ;;  %v159_v29 = vsub.f32 %v157_v25, %v158_v23 }
  0x73   :  { %v161_v31 = vsub.f32 %v156_v28, %v160_v26  ;;  %v165_v32 = vsub.f32 %v159_v29, %v164_v27  ;;  %v175_v42 = vsub.f32 %v145_v15, %v156_v28  ;;  %v179_v43 = vsub.f32 %v148_v16, %v159_v29 }
  0x75   :  { %v162_v33 = vmul.f32 %v161_v31, %v139_v30  ;;  %v166_v34 = vmul.f32 %v165_v32, %v139_v30 }
  0x77   :  { %v163_v35 = vadd.f32 %v162_v33, %v867_v9  ;;  %v167_v36 = vadd.f32 %v166_v34, %v870_v10  ;;  %v210_v33 = vstv %s903_s24 }
  0x79   :  { %v168_v37 = vmul.f32 %v167_v36, %v163_v35  ;;  %v169_v38 = vmul.f32 %v163_v35, %v823_v0  ;;  %v173_v39 = vmul.f32 %v167_v36, %v827_v2 }
  0x7b   :  { %v170_v40 = vmul.f32 %v168_v37, %v825_v1  ;;  %v172_v41 = vmul.f32 %v168_v37, %v829_v3 }
  0x7d   :  { %v171_v44 = vsub.f32 %v169_v38, %v170_v40  ;;  %v174_v45 = vsub.f32 %v172_v41, %v173_v39 }
  0x7f   :  { %v176_v46 = vadd.f32 %v175_v42, %v171_v44  ;;  %v180_v47 = vadd.f32 %v179_v43, %v174_v45  ;;  %v190_v48 = vadd.f32 %v171_v44, %v156_v28  ;;  %v196_v49 = vadd.f32 %v174_v45, %v159_v29 }
  0x81   :  { %v177_v50 = vmul.f32 %v176_v46, %v139_v30  ;;  %v181_v51 = vmul.f32 %v180_v47, %v139_v30  ;;  %v191_v54 = vmul.f32 3.0, %v190_v48  ;;  %v197_v55 = vmul.f32 3.0, %v196_v49 }
  0x83   :  { %v178_v52 = vadd.f32 %v177_v50, %v867_v9  ;;  %v182_v53 = vadd.f32 %v181_v51, %v870_v10  ;;  %v192_v60 = vadd.f32 %v191_v54, %v145_v15  ;;  %v198_v62 = vadd.f32 %v197_v55, %v148_v16 }
  0x85   :  { %v183_v56 = vmul.f32 %v182_v53, %v178_v52  ;;  %v184_v57 = vmul.f32 %v178_v52, %v823_v0  ;;  %v188_v58 = vmul.f32 %v182_v53, %v827_v2 }
  0x87   :  { %v185_v59 = vmul.f32 %v183_v56, %v825_v1  ;;  %v187_v61 = vmul.f32 %v183_v56, %v829_v3 }
  0x89   :  { %v186_v63 = vsub.f32 %v184_v57, %v185_v59  ;;  %v189_v6 = vsub.f32 %v187_v61, %v188_v58 }
  0x8b   :  { %v193_v8 = vadd.f32 %v192_v60, %v186_v63  ;;  %v199_v11 = vadd.f32 %v198_v62, %v189_v6 }
  0x8d   :  { %v194_v12 = vmul.f32 %v193_v8, %v141_v7  ;;  %v200_v13 = vmul.f32 %v199_v11, %v141_v7 }
  0x8f   :  { %v906_v4 = vadd.f32 %v194_v12, %v867_v9  ;;  %v909_v14 = vadd.f32 %v200_v13, %v870_v10  ;;  %v211_v10 = vstv %s208_s25  ;;  %v212_v12 = vstv %s209_s26 }
  0x91   :  { %203 = vst [vmem:[#allocation10 + $0x10] sm:$0xff] %v906_v4  ;;  %205 = vst [vmem:[#allocation10 + $0x18] sm:$0xff] %v909_v14  ;;  %v213_v5 = vmul.f32 %v909_v14, %v906_v4  ;;  %v214_v15 = vmul.f32 %v906_v4, %v823_v0  ;;  %v218_v16 = vmul.f32 %v909_v14, %v827_v2 }
  0x93   :  { %v215_v9 = vmul.f32 %v213_v5, %v825_v1  ;;  %v217_v17 = vmul.f32 %v213_v5, %v829_v3 }
  0x95   :  { %v216_v18 = vsub.f32 %v214_v15, %v215_v9  ;;  %v219_v19 = vsub.f32 %v217_v17, %v218_v16 }
  0x97   :  { %v220_v20 = vmul.f32 %v216_v18, %v211_v10  ;;  %v222_v21 = vmul.f32 %v219_v19, %v211_v10  ;;  %v231_v29 = vmul.f32 0.33333334, %v216_v18  ;;  %v235_v30 = vmul.f32 0.33333334, %v219_v19 }
  0x99   :  { %v221_v22 = vadd.f32 %v220_v20, %v906_v4  ;;  %v223_v23 = vadd.f32 %v222_v21, %v909_v14 }
  0x9b   :  { %v224_v24 = vmul.f32 %v223_v23, %v221_v22  ;;  %v225_v25 = vmul.f32 %v221_v22, %v823_v0  ;;  %v229_v26 = vmul.f32 %v223_v23, %v827_v2 }
  0x9d   :  { %v226_v27 = vmul.f32 %v224_v24, %v825_v1  ;;  %v228_v28 = vmul.f32 %v224_v24, %v829_v3 }
  0x9f   :  { %v227_v31 = vsub.f32 %v225_v25, %v226_v27  ;;  %v230_v32 = vsub.f32 %v228_v28, %v229_v26 }
  0xa1   :  { %v232_v34 = vsub.f32 %v227_v31, %v231_v29  ;;  %v236_v35 = vsub.f32 %v230_v32, %v235_v30  ;;  %v246_v45 = vsub.f32 %v216_v18, %v227_v31  ;;  %v250_v46 = vsub.f32 %v219_v19, %v230_v32 }
  0xa3   :  { %v233_v36 = vmul.f32 %v232_v34, %v210_v33  ;;  %v237_v37 = vmul.f32 %v236_v35, %v210_v33 }
  0xa5   :  { %v234_v38 = vadd.f32 %v233_v36, %v906_v4  ;;  %v238_v39 = vadd.f32 %v237_v37, %v909_v14  ;;  %v281_v36 = vstv %s942_s27 }
  0xa7   :  { %v239_v40 = vmul.f32 %v238_v39, %v234_v38  ;;  %v240_v41 = vmul.f32 %v234_v38, %v823_v0  ;;  %v244_v42 = vmul.f32 %v238_v39, %v827_v2 }
  0xa9   :  { %v241_v43 = vmul.f32 %v239_v40, %v825_v1  ;;  %v243_v44 = vmul.f32 %v239_v40, %v829_v3 }
  0xab   :  { %v242_v47 = vsub.f32 %v240_v41, %v241_v43  ;;  %v245_v48 = vsub.f32 %v243_v44, %v244_v42 }
  0xad   :  { %v247_v49 = vadd.f32 %v246_v45, %v242_v47  ;;  %v251_v50 = vadd.f32 %v250_v46, %v245_v48  ;;  %v261_v51 = vadd.f32 %v242_v47, %v227_v31  ;;  %v267_v52 = vadd.f32 %v245_v48, %v230_v32 }
  0xaf   :  { %v248_v53 = vmul.f32 %v247_v49, %v210_v33  ;;  %v252_v54 = vmul.f32 %v251_v50, %v210_v33  ;;  %v262_v57 = vmul.f32 3.0, %v261_v51  ;;  %v268_v58 = vmul.f32 3.0, %v267_v52 }
  0xb1   :  { %v249_v55 = vadd.f32 %v248_v53, %v906_v4  ;;  %v253_v56 = vadd.f32 %v252_v54, %v909_v14  ;;  %v263_v63 = vadd.f32 %v262_v57, %v216_v18  ;;  %v269_v7 = vadd.f32 %v268_v58, %v219_v19 }
  0xb3   :  { %v254_v59 = vmul.f32 %v253_v56, %v249_v55  ;;  %v255_v60 = vmul.f32 %v249_v55, %v823_v0  ;;  %v259_v61 = vmul.f32 %v253_v56, %v827_v2 }
  0xb5   :  { %v256_v62 = vmul.f32 %v254_v59, %v825_v1  ;;  %v258_v6 = vmul.f32 %v254_v59, %v829_v3 }
  0xb7   :  { %v257_v8 = vsub.f32 %v255_v60, %v256_v62  ;;  %v260_v11 = vsub.f32 %v258_v6, %v259_v61 }
  0xb9   :  { %v264_v13 = vadd.f32 %v263_v63, %v257_v8  ;;  %v270_v5 = vadd.f32 %v269_v7, %v260_v11 }
  0xbb   :  { %v265_v15 = vmul.f32 %v264_v13, %v212_v12  ;;  %v271_v16 = vmul.f32 %v270_v5, %v212_v12 }
  0xbd   :  { %v945_v9 = vadd.f32 %v265_v15, %v906_v4  ;;  %v948_v17 = vadd.f32 %v271_v16, %v909_v14  ;;  %v282_v14 = vstv %s279_s28  ;;  %v283_v15 = vstv %s280_s29 }
  0xbf   :  { %274 = vst [vmem:[#allocation10 + $0x20] sm:$0xff] %v945_v9  ;;  %276 = vst [vmem:[#allocation10 + $0x28] sm:$0xff] %v948_v17  ;;  %v284_v10 = vmul.f32 %v948_v17, %v945_v9  ;;  %v285_v18 = vmul.f32 %v945_v9, %v823_v0  ;;  %v289_v19 = vmul.f32 %v948_v17, %v827_v2 }
  0xc1   :  { %v286_v4 = vmul.f32 %v284_v10, %v825_v1  ;;  %v288_v20 = vmul.f32 %v284_v10, %v829_v3 }
  0xc3   :  { %v287_v21 = vsub.f32 %v285_v18, %v286_v4  ;;  %v290_v22 = vsub.f32 %v288_v20, %v289_v19 }
  0xc5   :  { %v291_v23 = vmul.f32 %v287_v21, %v282_v14  ;;  %v293_v24 = vmul.f32 %v290_v22, %v282_v14  ;;  %v302_v32 = vmul.f32 0.33333334, %v287_v21  ;;  %v306_v33 = vmul.f32 0.33333334, %v290_v22 }
  0xc7   :  { %v292_v25 = vadd.f32 %v291_v23, %v945_v9  ;;  %v294_v26 = vadd.f32 %v293_v24, %v948_v17 }
  0xc9   :  { %v295_v27 = vmul.f32 %v294_v26, %v292_v25  ;;  %v296_v28 = vmul.f32 %v292_v25, %v823_v0  ;;  %v300_v29 = vmul.f32 %v294_v26, %v827_v2 }
  0xcb   :  { %v297_v30 = vmul.f32 %v295_v27, %v825_v1  ;;  %v299_v31 = vmul.f32 %v295_v27, %v829_v3 }
  0xcd   :  { %v298_v34 = vsub.f32 %v296_v28, %v297_v30  ;;  %v301_v35 = vsub.f32 %v299_v31, %v300_v29 }
  0xcf   :  { %v303_v37 = vsub.f32 %v298_v34, %v302_v32  ;;  %v307_v38 = vsub.f32 %v301_v35, %v306_v33  ;;  %v317_v48 = vsub.f32 %v287_v21, %v298_v34  ;;  %v321_v49 = vsub.f32 %v290_v22, %v301_v35 }
  0xd1   :  { %v304_v39 = vmul.f32 %v303_v37, %v281_v36  ;;  %v308_v40 = vmul.f32 %v307_v38, %v281_v36 }
  0xd3   :  { %v305_v41 = vadd.f32 %v304_v39, %v945_v9  ;;  %v309_v42 = vadd.f32 %v308_v40, %v948_v17  ;;  %v352_v39 = vstv %s981_s30 }
  0xd5   :  { %v310_v43 = vmul.f32 %v309_v42, %v305_v41  ;;  %v311_v44 = vmul.f32 %v305_v41, %v823_v0  ;;  %v315_v45 = vmul.f32 %v309_v42, %v827_v2 }
  0xd7   :  { %v312_v46 = vmul.f32 %v310_v43, %v825_v1  ;;  %v314_v47 = vmul.f32 %v310_v43, %v829_v3 }
  0xd9   :  { %v313_v50 = vsub.f32 %v311_v44, %v312_v46  ;;  %v316_v51 = vsub.f32 %v314_v47, %v315_v45 }
  0xdb   :  { %v318_v52 = vadd.f32 %v317_v48, %v313_v50  ;;  %v322_v53 = vadd.f32 %v321_v49, %v316_v51  ;;  %v332_v54 = vadd.f32 %v313_v50, %v298_v34  ;;  %v338_v55 = vadd.f32 %v316_v51, %v301_v35 }
  0xdd   :  { %v319_v56 = vmul.f32 %v318_v52, %v281_v36  ;;  %v323_v57 = vmul.f32 %v322_v53, %v281_v36  ;;  %v333_v60 = vmul.f32 3.0, %v332_v54  ;;  %v339_v61 = vmul.f32 3.0, %v338_v55 }
  0xdf   :  { %v320_v58 = vadd.f32 %v319_v56, %v945_v9  ;;  %v324_v59 = vadd.f32 %v323_v57, %v948_v17  ;;  %v334_v8 = vadd.f32 %v333_v60, %v287_v21  ;;  %v340_v12 = vadd.f32 %v339_v61, %v290_v22 }
  0xe1   :  { %v325_v62 = vmul.f32 %v324_v59, %v320_v58  ;;  %v326_v63 = vmul.f32 %v320_v58, %v823_v0  ;;  %v330_v6 = vmul.f32 %v324_v59, %v827_v2 }
  0xe3   :  { %v327_v7 = vmul.f32 %v325_v62, %v825_v1  ;;  %v329_v11 = vmul.f32 %v325_v62, %v829_v3 }
  0xe5   :  { %v328_v13 = vsub.f32 %v326_v63, %v327_v7  ;;  %v331_v5 = vsub.f32 %v329_v11, %v330_v6 }
  0xe7   :  { %v335_v16 = vadd.f32 %v334_v8, %v328_v13  ;;  %v341_v10 = vadd.f32 %v340_v12, %v331_v5 }
  0xe9   :  { %v336_v18 = vmul.f32 %v335_v16, %v283_v15  ;;  %v342_v19 = vmul.f32 %v341_v10, %v283_v15 }
  0xeb   :  { %v984_v4 = vadd.f32 %v336_v18, %v945_v9  ;;  %v987_v20 = vadd.f32 %v342_v19, %v948_v17  ;;  %v353_v17 = vstv %s350_s0  ;;  %v354_v18 = vstv %s351_s6 }
  0xed   :  { %345 = vst [vmem:[#allocation10 + $0x30] sm:$0xff] %v984_v4  ;;  %347 = vst [vmem:[#allocation10 + $0x38] sm:$0xff] %v987_v20  ;;  %v355_v14 = vmul.f32 %v987_v20, %v984_v4  ;;  %v356_v21 = vmul.f32 %v984_v4, %v823_v0  ;;  %v360_v22 = vmul.f32 %v987_v20, %v827_v2 }
  0xef   :  { %v357_v9 = vmul.f32 %v355_v14, %v825_v1  ;;  %v359_v23 = vmul.f32 %v355_v14, %v829_v3 }
  0xf1   :  { %v358_v24 = vsub.f32 %v356_v21, %v357_v9  ;;  %v361_v25 = vsub.f32 %v359_v23, %v360_v22 }
  0xf3   :  { %v362_v26 = vmul.f32 %v358_v24, %v353_v17  ;;  %v364_v27 = vmul.f32 %v361_v25, %v353_v17  ;;  %v373_v35 = vmul.f32 0.33333334, %v358_v24  ;;  %v377_v36 = vmul.f32 0.33333334, %v361_v25 }
  0xf5   :  { %v363_v28 = vadd.f32 %v362_v26, %v984_v4  ;;  %v365_v29 = vadd.f32 %v364_v27, %v987_v20 }
  0xf7   :  { %v366_v30 = vmul.f32 %v365_v29, %v363_v28  ;;  %v367_v31 = vmul.f32 %v363_v28, %v823_v0  ;;  %v371_v32 = vmul.f32 %v365_v29, %v827_v2 }
  0xf9   :  { %v368_v33 = vmul.f32 %v366_v30, %v825_v1  ;;  %v370_v34 = vmul.f32 %v366_v30, %v829_v3 }
  0xfb   :  { %v369_v37 = vsub.f32 %v367_v31, %v368_v33  ;;  %v372_v38 = vsub.f32 %v370_v34, %v371_v32 }
  0xfd   :  { %v374_v40 = vsub.f32 %v369_v37, %v373_v35  ;;  %v378_v41 = vsub.f32 %v372_v38, %v377_v36  ;;  %v388_v51 = vsub.f32 %v358_v24, %v369_v37  ;;  %v392_v52 = vsub.f32 %v361_v25, %v372_v38 }
  0xff   :  { %v375_v42 = vmul.f32 %v374_v40, %v352_v39  ;;  %v379_v43 = vmul.f32 %v378_v41, %v352_v39 }
 0x101   :  { %v376_v44 = vadd.f32 %v375_v42, %v984_v4  ;;  %v380_v45 = vadd.f32 %v379_v43, %v987_v20  ;;  %v423_v42 = vstv %s1020_s7 }
 0x103   :  { %v381_v46 = vmul.f32 %v380_v45, %v376_v44  ;;  %v382_v47 = vmul.f32 %v376_v44, %v823_v0  ;;  %v386_v48 = vmul.f32 %v380_v45, %v827_v2 }
 0x105   :  { %v383_v49 = vmul.f32 %v381_v46, %v825_v1  ;;  %v385_v50 = vmul.f32 %v381_v46, %v829_v3 }
 0x107   :  { %v384_v53 = vsub.f32 %v382_v47, %v383_v49  ;;  %v387_v54 = vsub.f32 %v385_v50, %v386_v48 }
 0x109   :  { %v389_v55 = vadd.f32 %v388_v51, %v384_v53  ;;  %v393_v56 = vadd.f32 %v392_v52, %v387_v54  ;;  %v403_v57 = vadd.f32 %v384_v53, %v369_v37  ;;  %v409_v58 = vadd.f32 %v387_v54, %v372_v38 }
 0x10b   :  { %v390_v59 = vmul.f32 %v389_v55, %v352_v39  ;;  %v394_v60 = vmul.f32 %v393_v56, %v352_v39  ;;  %v404_v63 = vmul.f32 3.0, %v403_v57  ;;  %v410_v6 = vmul.f32 3.0, %v409_v58 }
 0x10d   :  { %v391_v61 = vadd.f32 %v390_v59, %v984_v4  ;;  %v395_v62 = vadd.f32 %v394_v60, %v987_v20  ;;  %v405_v13 = vadd.f32 %v404_v63, %v358_v24  ;;  %v411_v15 = vadd.f32 %v410_v6, %v361_v25 }
 0x10f   :  { %v396_v7 = vmul.f32 %v395_v62, %v391_v61  ;;  %v397_v8 = vmul.f32 %v391_v61, %v823_v0  ;;  %v401_v11 = vmul.f32 %v395_v62, %v827_v2 }
 0x111   :  { %v398_v12 = vmul.f32 %v396_v7, %v825_v1  ;;  %v400_v5 = vmul.f32 %v396_v7, %v829_v3 }
 0x113   :  { %v399_v16 = vsub.f32 %v397_v8, %v398_v12  ;;  %v402_v10 = vsub.f32 %v400_v5, %v401_v11 }
 0x115   :  { %v406_v19 = vadd.f32 %v405_v13, %v399_v16  ;;  %v412_v14 = vadd.f32 %v411_v15, %v402_v10 }
 0x117   :  { %v407_v21 = vmul.f32 %v406_v19, %v354_v18  ;;  %v413_v22 = vmul.f32 %v412_v14, %v354_v18 }
 0x119   :  { %v1023_v9 = vadd.f32 %v407_v21, %v984_v4  ;;  %v1026_v23 = vadd.f32 %v413_v22, %v987_v20  ;;  %v424_v20 = vstv %s421_s8  ;;  %v425_v21 = vstv %s422_s9 }
 0x11b   :  { %416 = vst [vmem:[#allocation10 + $0x40] sm:$0xff] %v1023_v9  ;;  %418 = vst [vmem:[#allocation10 + $0x48] sm:$0xff] %v1026_v23  ;;  %v426_v17 = vmul.f32 %v1026_v23, %v1023_v9  ;;  %v427_v24 = vmul.f32 %v1023_v9, %v823_v0  ;;  %v431_v25 = vmul.f32 %v1026_v23, %v827_v2 }
 0x11d   :  { %v428_v4 = vmul.f32 %v426_v17, %v825_v1  ;;  %v430_v26 = vmul.f32 %v426_v17, %v829_v3 }
 0x11f   :  { %v429_v27 = vsub.f32 %v427_v24, %v428_v4  ;;  %v432_v28 = vsub.f32 %v430_v26, %v431_v25 }
 0x121   :  { %v433_v29 = vmul.f32 %v429_v27, %v424_v20  ;;  %v435_v30 = vmul.f32 %v432_v28, %v424_v20  ;;  %v444_v38 = vmul.f32 0.33333334, %v429_v27  ;;  %v448_v39 = vmul.f32 0.33333334, %v432_v28 }
 0x123   :  { %v434_v31 = vadd.f32 %v433_v29, %v1023_v9  ;;  %v436_v32 = vadd.f32 %v435_v30, %v1026_v23 }
 0x125   :  { %v437_v33 = vmul.f32 %v436_v32, %v434_v31  ;;  %v438_v34 = vmul.f32 %v434_v31, %v823_v0  ;;  %v442_v35 = vmul.f32 %v436_v32, %v827_v2 }
 0x127   :  { %v439_v36 = vmul.f32 %v437_v33, %v825_v1  ;;  %v441_v37 = vmul.f32 %v437_v33, %v829_v3 }
 0x129   :  { %v440_v40 = vsub.f32 %v438_v34, %v439_v36  ;;  %v443_v41 = vsub.f32 %v441_v37, %v442_v35 }
 0x12b   :  { %v445_v43 = vsub.f32 %v440_v40, %v444_v38  ;;  %v449_v44 = vsub.f32 %v443_v41, %v448_v39  ;;  %v459_v54 = vsub.f32 %v429_v27, %v440_v40  ;;  %v463_v55 = vsub.f32 %v432_v28, %v443_v41 }
 0x12d   :  { %v446_v45 = vmul.f32 %v445_v43, %v423_v42  ;;  %v450_v46 = vmul.f32 %v449_v44, %v423_v42 }
 0x12f   :  { %v447_v47 = vadd.f32 %v446_v45, %v1023_v9  ;;  %v451_v48 = vadd.f32 %v450_v46, %v1026_v23  ;;  %v494_v45 = vstv %s1059_s10 }
 0x131   :  { %v452_v49 = vmul.f32 %v451_v48, %v447_v47  ;;  %v453_v50 = vmul.f32 %v447_v47, %v823_v0  ;;  %v457_v51 = vmul.f32 %v451_v48, %v827_v2 }
 0x133   :  { %v454_v52 = vmul.f32 %v452_v49, %v825_v1  ;;  %v456_v53 = vmul.f32 %v452_v49, %v829_v3 }
 0x135   :  { %v455_v56 = vsub.f32 %v453_v50, %v454_v52  ;;  %v458_v57 = vsub.f32 %v456_v53, %v457_v51 }
 0x137   :  { %v460_v58 = vadd.f32 %v459_v54, %v455_v56  ;;  %v464_v59 = vadd.f32 %v463_v55, %v458_v57  ;;  %v474_v60 = vadd.f32 %v455_v56, %v440_v40  ;;  %v480_v61 = vadd.f32 %v458_v57, %v443_v41 }
 0x139   :  { %v461_v62 = vmul.f32 %v460_v58, %v423_v42  ;;  %v465_v63 = vmul.f32 %v464_v59, %v423_v42  ;;  %v475_v8 = vmul.f32 3.0, %v474_v60  ;;  %v481_v11 = vmul.f32 3.0, %v480_v61 }
 0x13b   :  { %v462_v6 = vadd.f32 %v461_v62, %v1023_v9  ;;  %v466_v7 = vadd.f32 %v465_v63, %v1026_v23  ;;  %v476_v16 = vadd.f32 %v475_v8, %v429_v27  ;;  %v482_v18 = vadd.f32 %v481_v11, %v432_v28 }
 0x13d   :  { %v467_v12 = vmul.f32 %v466_v7, %v462_v6  ;;  %v468_v13 = vmul.f32 %v462_v6, %v823_v0  ;;  %v472_v5 = vmul.f32 %v466_v7, %v827_v2 }
 0x13f   :  { %v469_v15 = vmul.f32 %v467_v12, %v825_v1  ;;  %v471_v10 = vmul.f32 %v467_v12, %v829_v3 }
 0x141   :  { %v470_v19 = vsub.f32 %v468_v13, %v469_v15  ;;  %v473_v14 = vsub.f32 %v471_v10, %v472_v5 }
 0x143   :  { %v477_v22 = vadd.f32 %v476_v16, %v470_v19  ;;  %v483_v17 = vadd.f32 %v482_v18, %v473_v14 }
 0x145   :  { %v478_v24 = vmul.f32 %v477_v22, %v425_v21  ;;  %v484_v25 = vmul.f32 %v483_v17, %v425_v21 }
 0x147   :  { %v1062_v4 = vadd.f32 %v478_v24, %v1023_v9  ;;  %v1065_v26 = vadd.f32 %v484_v25, %v1026_v23  ;;  %v495_v23 = vstv %s492_s11  ;;  %v496_v24 = vstv %s493_s12 }
 0x149   :  { %487 = vst [vmem:[#allocation10 + $0x50] sm:$0xff] %v1062_v4  ;;  %489 = vst [vmem:[#allocation10 + $0x58] sm:$0xff] %v1065_v26  ;;  %v497_v20 = vmul.f32 %v1065_v26, %v1062_v4  ;;  %v498_v27 = vmul.f32 %v1062_v4, %v823_v0  ;;  %v502_v28 = vmul.f32 %v1065_v26, %v827_v2 }
 0x14b   :  { %v499_v9 = vmul.f32 %v497_v20, %v825_v1  ;;  %v501_v29 = vmul.f32 %v497_v20, %v829_v3 }
 0x14d   :  { %v500_v30 = vsub.f32 %v498_v27, %v499_v9  ;;  %v503_v31 = vsub.f32 %v501_v29, %v502_v28 }
 0x14f   :  { %v504_v32 = vmul.f32 %v500_v30, %v495_v23  ;;  %v506_v33 = vmul.f32 %v503_v31, %v495_v23  ;;  %v515_v41 = vmul.f32 0.33333334, %v500_v30  ;;  %v519_v42 = vmul.f32 0.33333334, %v503_v31 }
 0x151   :  { %v505_v34 = vadd.f32 %v504_v32, %v1062_v4  ;;  %v507_v35 = vadd.f32 %v506_v33, %v1065_v26 }
 0x153   :  { %v508_v36 = vmul.f32 %v507_v35, %v505_v34  ;;  %v509_v37 = vmul.f32 %v505_v34, %v823_v0  ;;  %v513_v38 = vmul.f32 %v507_v35, %v827_v2 }
 0x155   :  { %v510_v39 = vmul.f32 %v508_v36, %v825_v1  ;;  %v512_v40 = vmul.f32 %v508_v36, %v829_v3 }
 0x157   :  { %v511_v43 = vsub.f32 %v509_v37, %v510_v39  ;;  %v514_v44 = vsub.f32 %v512_v40, %v513_v38 }
 0x159   :  { %v516_v46 = vsub.f32 %v511_v43, %v515_v41  ;;  %v520_v47 = vsub.f32 %v514_v44, %v519_v42  ;;  %v530_v57 = vsub.f32 %v500_v30, %v511_v43  ;;  %v534_v58 = vsub.f32 %v503_v31, %v514_v44 }
 0x15b   :  { %v517_v48 = vmul.f32 %v516_v46, %v494_v45  ;;  %v521_v49 = vmul.f32 %v520_v47, %v494_v45 }
 0x15d   :  { %v518_v50 = vadd.f32 %v517_v48, %v1062_v4  ;;  %v522_v51 = vadd.f32 %v521_v49, %v1065_v26  ;;  %v565_v48 = vstv %s1098_s13 }
 0x15f   :  { %v523_v52 = vmul.f32 %v522_v51, %v518_v50  ;;  %v524_v53 = vmul.f32 %v518_v50, %v823_v0  ;;  %v528_v54 = vmul.f32 %v522_v51, %v827_v2 }
 0x161   :  { %v525_v55 = vmul.f32 %v523_v52, %v825_v1  ;;  %v527_v56 = vmul.f32 %v523_v52, %v829_v3 }
 0x163   :  { %v526_v59 = vsub.f32 %v524_v53, %v525_v55  ;;  %v529_v60 = vsub.f32 %v527_v56, %v528_v54  ;;  %v665_v55 = vld [vmem:[#allocation8] sm:$0xff] }
 0x165   :  { %v531_v61 = vadd.f32 %v530_v57, %v526_v59  ;;  %v535_v62 = vadd.f32 %v534_v58, %v529_v60  ;;  %v545_v63 = vadd.f32 %v526_v59, %v511_v43  ;;  %v551_v6 = vadd.f32 %v529_v60, %v514_v44  ;;  %v666_v57 = vld [vmem:[#allocation8 + $0x8] sm:$0xff]  ;;  %v667_v58 = vld [vmem:[#allocation8 + $0x18] sm:$0xff] }
 0x167   :  { %v532_v7 = vmul.f32 %v531_v61, %v494_v45  ;;  %v536_v8 = vmul.f32 %v535_v62, %v494_v45  ;;  %v546_v13 = vmul.f32 3.0, %v545_v63  ;;  %v552_v5 = vmul.f32 3.0, %v551_v6 }
 0x169   :  { %v533_v11 = vadd.f32 %v532_v7, %v1062_v4  ;;  %v537_v12 = vadd.f32 %v536_v8, %v1065_v26  ;;  %v547_v19 = vadd.f32 %v546_v13, %v500_v30  ;;  %v553_v21 = vadd.f32 %v552_v5, %v503_v31 }
 0x16b   :  { %v538_v15 = vmul.f32 %v537_v12, %v533_v11  ;;  %v539_v16 = vmul.f32 %v533_v11, %v823_v0  ;;  %v543_v10 = vmul.f32 %v537_v12, %v827_v2 }
 0x16d   :  { %v540_v18 = vmul.f32 %v538_v15, %v825_v1  ;;  %v542_v14 = vmul.f32 %v538_v15, %v829_v3 }
 0x16f   :  { %v541_v22 = vsub.f32 %v539_v16, %v540_v18  ;;  %v544_v17 = vsub.f32 %v542_v14, %v543_v10 }
 0x171   :  { %v548_v25 = vadd.f32 %v547_v19, %v541_v22  ;;  %v554_v20 = vadd.f32 %v553_v21, %v544_v17  ;;  %v668_v19 = vld [vmem:[#allocation8 + $0x10] sm:$0xff] }
 0x173   :  { %v549_v27 = vmul.f32 %v548_v25, %v496_v24  ;;  %v555_v28 = vmul.f32 %v554_v20, %v496_v24 }
 0x175   :  { %v1101_v9 = vadd.f32 %v549_v27, %v1062_v4  ;;  %v1104_v29 = vadd.f32 %v555_v28, %v1065_v26  ;;  %v566_v26 = vstv %s563_s14  ;;  %v567_v27 = vstv %s564_s15 }
 0x177   :  { %558 = vst [vmem:[#allocation10 + $0x60] sm:$0xff] %v1101_v9  ;;  %560 = vst [vmem:[#allocation10 + $0x68] sm:$0xff] %v1104_v29  ;;  %v568_v23 = vmul.f32 %v1104_v29, %v1101_v9  ;;  %v569_v30 = vmul.f32 %v1101_v9, %v823_v0  ;;  %v573_v31 = vmul.f32 %v1104_v29, %v827_v2 }
 0x179   :  { %v570_v4 = vmul.f32 %v568_v23, %v825_v1  ;;  %v572_v32 = vmul.f32 %v568_v23, %v829_v3 }
 0x17b   :  { %v571_v33 = vsub.f32 %v569_v30, %v570_v4  ;;  %v574_v34 = vsub.f32 %v572_v32, %v573_v31 }
 0x17d   :  { %v575_v35 = vmul.f32 %v571_v33, %v566_v26  ;;  %v577_v36 = vmul.f32 %v574_v34, %v566_v26  ;;  %v586_v44 = vmul.f32 0.33333334, %v571_v33  ;;  %v590_v45 = vmul.f32 0.33333334, %v574_v34 }
 0x17f   :  { %v576_v37 = vadd.f32 %v575_v35, %v1101_v9  ;;  %v578_v38 = vadd.f32 %v577_v36, %v1104_v29 }
 0x181   :  { %v579_v39 = vmul.f32 %v578_v38, %v576_v37  ;;  %v580_v40 = vmul.f32 %v576_v37, %v823_v0  ;;  %v584_v41 = vmul.f32 %v578_v38, %v827_v2 }
 0x183   :  { %v581_v42 = vmul.f32 %v579_v39, %v825_v1  ;;  %v583_v43 = vmul.f32 %v579_v39, %v829_v3 }
 0x185   :  { %v582_v46 = vsub.f32 %v580_v40, %v581_v42  ;;  %v585_v47 = vsub.f32 %v583_v43, %v584_v41 }
 0x187   :  { %v587_v49 = vsub.f32 %v582_v46, %v586_v44  ;;  %v591_v50 = vsub.f32 %v585_v47, %v590_v45  ;;  %v601_v60 = vsub.f32 %v571_v33, %v582_v46  ;;  %v605_v61 = vsub.f32 %v574_v34, %v585_v47 }
 0x189   :  { %v588_v51 = vmul.f32 %v587_v49, %v565_v48  ;;  %v592_v52 = vmul.f32 %v591_v50, %v565_v48 }
 0x18b   :  { %v589_v53 = vadd.f32 %v588_v51, %v1101_v9  ;;  %v593_v54 = vadd.f32 %v592_v52, %v1104_v29 }
 0x18d   :  { %v594_v0 = vmul.f32 %v593_v54, %v589_v53  ;;  %v595_v56 = vmul.f32 %v665_v55, %v589_v53  ;;  %v599_v1 = vmul.f32 %v593_v54, %v827_v2 }
 0x18f   :  { %v596_v3 = vmul.f32 %v666_v57, %v594_v0  ;;  %v598_v59 = vmul.f32 %v667_v58, %v594_v0 }
 0x191   :  { %v597_v62 = vsub.f32 %v595_v56, %v596_v3  ;;  %v600_v63 = vsub.f32 %v598_v59, %v599_v1 }
 0x193   :  { %v602_v6 = vadd.f32 %v601_v60, %v597_v62  ;;  %v606_v7 = vadd.f32 %v605_v61, %v600_v63  ;;  %v616_v8 = vadd.f32 %v597_v62, %v582_v46  ;;  %v622_v11 = vadd.f32 %v600_v63, %v585_v47 }
 0x195   :  { %v603_v12 = vmul.f32 %v602_v6, %v565_v48  ;;  %v607_v13 = vmul.f32 %v606_v7, %v565_v48  ;;  %v617_v2 = vmul.f32 3.0, %v616_v8  ;;  %v623_v16 = vmul.f32 3.0, %v622_v11 }
 0x197   :  { %v604_v5 = vadd.f32 %v603_v12, %v1101_v9  ;;  %v608_v15 = vadd.f32 %v607_v13, %v1104_v29  ;;  %v618_v22 = vadd.f32 %v617_v2, %v571_v33  ;;  %v624_v24 = vadd.f32 %v623_v16, %v574_v34 }
 0x199   :  { %v609_v10 = vmul.f32 %v608_v15, %v604_v5  ;;  %v610_v18 = vmul.f32 %v665_v55, %v604_v5  ;;  %v614_v14 = vmul.f32 %v668_v19, %v608_v15 }
 0x19b   :  { %v611_v21 = vmul.f32 %v666_v57, %v609_v10  ;;  %v613_v17 = vmul.f32 %v667_v58, %v609_v10 }
 0x19d   :  { %v612_v25 = vsub.f32 %v610_v18, %v611_v21  ;;  %v615_v20 = vsub.f32 %v613_v17, %v614_v14 }
 0x19f   :  { %v619_v28 = vadd.f32 %v618_v22, %v612_v25  ;;  %v625_v23 = vadd.f32 %v624_v24, %v615_v20 }
 0x1a1   :  { %v620_v30 = vmul.f32 %v619_v28, %v567_v27  ;;  %v626_v31 = vmul.f32 %v625_v23, %v567_v27 }
 0x1a3   :  { %v621_v4 = vadd.f32 %v620_v30, %v1101_v9  ;;  %v627_v32 = vadd.f32 %v626_v31, %v1104_v29 }
 0x1a5   :  { %629 = vst [vmem:[#allocation10 + $0x70] sm:$0xff] %v621_v4  ;;  %631 = vst [vmem:[#allocation10 + $0x78] sm:$0xff] %v627_v32 }
 0x1a6   :  { %734 = shalt.err (!%p731_p9)
}
 0x1a7   :  { %s735_s2 = scalar_lea.hbm %s1150_s3, 2048 }
 0x1a8   :  { %p736_p10 = scmp.ne.s32.totalorder %s1150_s3, %s735_s2  ;;  %p739_p11 = scmp.lt.u32.totalorder %s735_s2, %s1150_s3 }
 0x1aa   :  { %p741_p12 = pnand %p739_p11, %p736_p10 }
 0x1ac   :  { %744 = shalt.err (!%p741_p12)
}
 0x1ad   :  { %645 = dma.vmem_to_hbm [thread:$0]  %s640_s17, 2048, %s1150_s3, [#allocation7], %s755_s4, %s755_s4, %s756_s5  }
 0x1ae   :  { %751 = dma.done.wait [#allocation7], 2048  }
 0x1af   :  { %752 = vsyncadd [#allocation7], 4294965248 }
 0x1b0   :  { %649 = vsyncpa [#allocation6], 1 }
 0x1b1   :  { %650 = vsyncpa [#allocation9], 1 }
 0x1b2   :  { %651 = vsyncpa [#allocation7], 1 }

</bundles_post_ra>
